<compile_context>
chip_gen: v7x
topology: tpu7x:2x2x1
jax: 0.10.0
libtpu: 0.0.40
codegen_flags: <defaults>
</compile_context>

<pallas_src>
import math
import functools

import jax
import jax.numpy as jnp
from jax import lax
from jax.experimental import pallas as pl
from jax.experimental.pallas import tpu as pltpu


# ----------------------------- kernel helpers -----------------------------

def _layer_norm(x, g, b, eps=1e-5):
    # x: (R, H) f32, g/b: (1, H) f32  (stats kept in f32)
    mu = jnp.mean(x, axis=-1, keepdims=True)
    var = jnp.mean((x - mu) ** 2, axis=-1, keepdims=True)
    return (x - mu) * lax.rsqrt(var + eps) * g + b


# ----------------------------- fused kernel -----------------------------

def _fused_transformer_kernel(num_layers, num_heads,
                              src_ref, w_emb_ref, b_emb_ref, pe_ref, mask_ref,
                              wqkv_ref, bqkv_ref, wo_ref, bo_ref,
                              ln1g_ref, ln1b_ref,
                              w1_ref, b1_ref, w2_ref, b2_ref,
                              ln2g_ref, ln2b_ref,
                              w_out_ref, b_out_ref,
                              o_ref, x_scratch):
    layer = pl.program_id(1)
    bf16 = jnp.bfloat16
    f32 = jnp.float32

    BT, S, I = src_ref.shape
    _, _, H = x_scratch.shape
    O = w_out_ref.shape[1]
    nh = num_heads
    hd = H // nh
    scale = 1.0 / math.sqrt(hd)

    # -------- layer 0: input embedding + positional encoding --------
    @pl.when(layer == 0)
    def _embed():
        src = src_ref[...].reshape(BT * S, I)
        x0 = jnp.dot(src.astype(bf16), w_emb_ref[...],
                     preferred_element_type=f32) + b_emb_ref[...]
        x_scratch[...] = x0.reshape(BT, S, H) + pe_ref[...][None, :, :]

    x = x_scratch[...]                              # (BT, S, H) float32
    x_flat = x.reshape(BT * S, H)
    xb = x_flat.astype(bf16)

    # -------- fused QKV projection: one (H, 3H) MXU pass over all rows --------
    qkv = jnp.dot(xb, wqkv_ref[0], preferred_element_type=f32) + bqkv_ref[0]   # (BT*S, 3H)

    # -------- multi-head causal attention (all heads at once, per batch elem) --------
    mask = mask_ref[...][None, :, :]                # (1, S, S) additive causal mask
    attn_rows = []
    for b in range(BT):                             # static unroll over batch tile
        qkv_b = qkv[b * S:(b + 1) * S]              # (S, 3H)
        q = qkv_b[:, :H].reshape(S, nh, hd).swapaxes(0, 1)          # (nh, S, hd)
        k = qkv_b[:, H:2 * H].reshape(S, nh, hd).swapaxes(0, 1)     # (nh, S, hd)
        v = qkv_b[:, 2 * H:].reshape(S, nh, hd).swapaxes(0, 1)      # (nh, S, hd)

        s = jnp.einsum('hqd,hkd->hqk', q.astype(bf16), k.astype(bf16),
                       preferred_element_type=f32) * scale
        s = s + mask
        s = s - jnp.max(s, axis=-1, keepdims=True)
        e = jnp.exp(s)
        p = e * pl.reciprocal(jnp.sum(e, axis=-1, keepdims=True), approx=True)
        ctx = jnp.einsum('hqk,hkd->hqd', p.astype(bf16), v.astype(bf16),
                         preferred_element_type=f32)                 # (nh, S, hd)
        attn_rows.append(ctx.swapaxes(0, 1).reshape(S, H))
    attn = attn_rows[0] if BT == 1 else jnp.concatenate(attn_rows, axis=0)   # (BT*S, H)

    attn = jnp.dot(attn.astype(bf16), wo_ref[0],
                   preferred_element_type=f32) + bo_ref[0]

    x1 = _layer_norm(x_flat + attn, ln1g_ref[0], ln1b_ref[0])        # post-norm, f32

    # -------- feed-forward (ReLU) --------
    h1 = jnp.dot(x1.astype(bf16), w1_ref[0],
                 preferred_element_type=f32) + b1_ref[0]
    h1 = jnp.maximum(h1, 0.0)
    h2 = jnp.dot(h1.astype(bf16), w2_ref[0],
                 preferred_element_type=f32) + b2_ref[0]

    x2 = _layer_norm(x1 + h2, ln2g_ref[0], ln2b_ref[0])               # (BT*S, H)
    x_scratch[...] = x2.reshape(BT, S, H)

    # -------- last layer: output projection --------
    @pl.when(layer == num_layers - 1)
    def _project():
        y = jnp.dot(x2.astype(bf16), w_out_ref[...],
                    preferred_element_type=f32) + b_out_ref[...]
        o_ref[...] = y.reshape(BT, S, O).astype(o_ref.dtype)


# ----------------------------- wrapper -----------------------------

def _padded_block_bytes(shape, dtype):
    itemsize = jnp.dtype(dtype).itemsize
    if len(shape) < 2:
        n = shape[0] if shape else 1
        return ((n * itemsize + 511) // 512) * 512
    lead = 1
    for d in shape[:-2]:
        lead *= d
    sub = -(-shape[-2] // 16) * 16
    lane = -(-shape[-1] // 128) * 128
    return lead * sub * lane * itemsize


def _vmem_limit_bytes(blocks):
    total = sum(_padded_block_bytes(s, d) for s, d in blocks)
    # double-buffered inputs/outputs + scratch + headroom; clamp to a portable range
    return int(min(max(4 * total + (2 << 20), 32 << 20), 64 << 20))


def _choose_batch_tile(B, S, H, ff):
    # keep the per-step activation footprint (scratch + intermediates) small
    budget = 4 << 20
    per_b = S * max(6 * H, ff + H) * 4
    bt = max(1, min(B, budget // max(per_b, 1)))
    while B % bt:
        bt -= 1
    return bt


def climate_transformer_forward(params, src):
    """src: [B, S, input_dim] -> [B, S, output_dim] (single fused pallas_call)."""
    B, S, I = src.shape
    H = params["w_emb"].shape[1]
    O = params["w_out"].shape[1]
    L = int(params["num_layers"])
    nh = int(params["num_heads"])
    ff = params["w1"].shape[-1]
    BT = _choose_batch_tile(B, S, H, ff)

    pe = params["pe"][:S]
    # == nn.Transformer.generate_square_subsequent_mask(S) (additive, 0 / -inf-like)
    mask = jnp.triu(jnp.full((S, S), -1e30, jnp.float32), k=1)

    def rep(shape):
        nd = len(shape)
        return pl.BlockSpec(shape, lambda b, l, _nd=nd: (0,) * _nd)

    def per_layer(shape):
        nd = len(shape)
        return pl.BlockSpec((1,) + shape, lambda b, l, _nd=nd: (l,) + (0,) * _nd)

    in_specs = [
        pl.BlockSpec((BT, S, I), lambda b, l: (b, 0, 0)),     # src
        rep((I, H)), rep((1, H)), rep((S, H)), rep((S, S)),    # w_emb, b_emb, pe, mask
        per_layer((H, 3 * H)), per_layer((1, 3 * H)),          # wqkv, bqkv
        per_layer((H, H)), per_layer((1, H)),                  # wo, bo
        per_layer((1, H)), per_layer((1, H)),                  # ln1g, ln1b
        per_layer((H, ff)), per_layer((1, ff)),                # w1, b1
        per_layer((ff, H)), per_layer((1, H)),                 # w2, b2
        per_layer((1, H)), per_layer((1, H)),                  # ln2g, ln2b
        rep((H, O)), rep((1, O)),                              # w_out, b_out
    ]

    blocks = [
        ((BT, S, I), src.dtype), ((I, H), jnp.bfloat16), ((1, H), jnp.float32),
        ((S, H), jnp.float32), ((S, S), jnp.float32),
        ((1, H, 3 * H), jnp.bfloat16), ((1, 1, 3 * H), jnp.float32),
        ((1, H, H), jnp.bfloat16), ((1, 1, H), jnp.float32),
        ((1, 1, H), jnp.float32), ((1, 1, H), jnp.float32),
        ((1, H, ff), jnp.bfloat16), ((1, 1, ff), jnp.float32),
        ((1, ff, H), jnp.bfloat16), ((1, 1, H), jnp.float32),
        ((1, 1, H), jnp.float32), ((1, 1, H), jnp.float32),
        ((H, O), jnp.bfloat16), ((1, O), jnp.float32),
        ((BT, S, O), jnp.float32),     # output block
        ((BT, S, H), jnp.float32),     # activation scratch
    ]

    kernel = functools.partial(_fused_transformer_kernel, L, nh)
    return pl.pallas_call(
        kernel,
        out_shape=jax.ShapeDtypeStruct((B, S, O), jnp.float32),
        grid=(B // BT, L),
        in_specs=in_specs,
        out_specs=pl.BlockSpec((BT, S, O), lambda b, l: (b, 0, 0)),
        scratch_shapes=[pltpu.VMEM((BT, S, H), jnp.float32)],
        compiler_params=pltpu.CompilerParams(
            dimension_semantics=("parallel", "arbitrary"),
            vmem_limit_bytes=_vmem_limit_bytes(blocks)),
    )(src, params["w_emb"], params["b_emb"], pe, mask,
      params["wqkv"], params["bqkv"], params["wo"], params["bo"],
      params["ln1g"], params["ln1b"],
      params["w1"], params["b1"], params["w2"], params["b2"],
      params["ln2g"], params["ln2b"],
      params["w_out"], params["b_out"])


# ----------------------------- parameters -----------------------------

def positional_encoding(max_len, d_model):
    position = jnp.arange(max_len, dtype=jnp.float32)[:, None]
    div_term = jnp.exp(jnp.arange(0, d_model, 2, dtype=jnp.float32)
                       * (-math.log(10000.0) / d_model))
    pe = jnp.zeros((max_len, d_model), jnp.float32)
    pe = pe.at[:, 0::2].set(jnp.sin(position * div_term))
    pe = pe.at[:, 1::2].set(jnp.cos(position * div_term))
    return pe


def _xavier(key, shape):
    fan_in, fan_out = shape
    limit = math.sqrt(6.0 / (fan_in + fan_out))
    return jax.random.uniform(key, shape, jnp.float32, -limit, limit)


def init_params(key, input_dim, hidden_dim, output_dim, num_heads, num_layers, max_len=64):
    ff = hidden_dim * 4
    keys = jax.random.split(key, 2 + 4 * num_layers)
    k_emb, k_out, lkeys = keys[0], keys[1], keys[2:]

    wqkv, wo, w1, w2 = [], [], [], []
    for i in range(num_layers):
        wqkv.append(_xavier(lkeys[4 * i + 0], (hidden_dim, 3 * hidden_dim)))
        wo.append(_xavier(lkeys[4 * i + 1], (hidden_dim, hidden_dim)))
        w1.append(_xavier(lkeys[4 * i + 2], (hidden_dim, ff)))
        w2.append(_xavier(lkeys[4 * i + 3], (ff, hidden_dim)))

    bf16, f32 = jnp.bfloat16, jnp.float32
    return {
        "num_heads": num_heads,
        "num_layers": num_layers,
        "w_emb": _xavier(k_emb, (input_dim, hidden_dim)).astype(bf16),
        "b_emb": jnp.zeros((1, hidden_dim), f32),
        "pe": positional_encoding(max_len, hidden_dim),
        "w_out": _xavier(k_out, (hidden_dim, output_dim)).astype(bf16),
        "b_out": jnp.zeros((1, output_dim), f32),
        "wqkv": jnp.stack(wqkv).astype(bf16),
        "bqkv": jnp.zeros((num_layers, 1, 3 * hidden_dim), f32),
        "wo": jnp.stack(wo).astype(bf16),
        "bo": jnp.zeros((num_layers, 1, hidden_dim), f32),
        "ln1g": jnp.ones((num_layers, 1, hidden_dim), f32),
        "ln1b": jnp.zeros((num_layers, 1, hidden_dim), f32),
        "w1": jnp.stack(w1).astype(bf16),
        "b1": jnp.zeros((num_layers, 1, ff), f32),
        "w2": jnp.stack(w2).astype(bf16),
        "b2": jnp.zeros((num_layers, 1, hidden_dim), f32),
        "ln2g": jnp.ones((num_layers, 1, hidden_dim), f32),
        "ln2b": jnp.zeros((num_layers, 1, hidden_dim), f32),
    }


# ----------------------------- main -----------------------------

if __name__ == "__main__":
    B, S = 2, 8
    input_dim, hidden_dim, output_dim = 4, 32, 4
    num_heads, num_layers = 4, 2

    key = jax.random.PRNGKey(0)
    k_param, k_src = jax.random.split(key)
    params = init_params(k_param, input_dim, hidden_dim, output_dim,
                         num_heads, num_layers, max_len=S)
    src = jax.random.normal(k_src, (B, S, input_dim), jnp.float32)

    out = climate_transformer_forward(params, src)
    jax.block_until_ready(out)
    assert out.shape == (B, S, output_dim)
    assert bool(jnp.all(jnp.isfinite(out)))
    print("KERNEL_OK")
</pallas_src>

<mosaic_0001>
module attributes {stable_mosaic.version = 11 : i64} {
  func.func @_fused_transformer_kernel(%arg0: i32, %arg1: i32, %arg2: memref<2x8x4xf32, #tpu.memory_space<vmem>>, %arg3: memref<4x32xbf16, #tpu.memory_space<vmem>>, %arg4: memref<1x32xf32, #tpu.memory_space<vmem>>, %arg5: memref<8x32xf32, #tpu.memory_space<vmem>>, %arg6: memref<8x8xf32, #tpu.memory_space<vmem>>, %arg7: memref<1x32x96xbf16, #tpu.memory_space<vmem>>, %arg8: memref<1x1x96xf32, #tpu.memory_space<vmem>>, %arg9: memref<1x32x32xbf16, #tpu.memory_space<vmem>>, %arg10: memref<1x1x32xf32, #tpu.memory_space<vmem>>, %arg11: memref<1x1x32xf32, #tpu.memory_space<vmem>>, %arg12: memref<1x1x32xf32, #tpu.memory_space<vmem>>, %arg13: memref<1x32x128xbf16, #tpu.memory_space<vmem>>, %arg14: memref<1x1x128xf32, #tpu.memory_space<vmem>>, %arg15: memref<1x128x32xbf16, #tpu.memory_space<vmem>>, %arg16: memref<1x1x32xf32, #tpu.memory_space<vmem>>, %arg17: memref<1x1x32xf32, #tpu.memory_space<vmem>>, %arg18: memref<1x1x32xf32, #tpu.memory_space<vmem>>, %arg19: memref<32x4xbf16, #tpu.memory_space<vmem>>, %arg20: memref<1x4xf32, #tpu.memory_space<vmem>>, %arg21: memref<2x8x4xf32, #tpu.memory_space<vmem>>, %arg22: memref<2x8x32xf32, #tpu.memory_space<vmem>>) attributes {dimension_semantics = [#tpu.dimension_semantics<parallel>, #tpu.dimension_semantics<arbitrary>], iteration_bounds = array<i64: 1, 2>, scalar_prefetch = 0 : i64, scratch_operands = 1 : i64, tpu.core_type = #tpu.core_type<tc>, window_params = [{transform_indices = @transform_0, window_bounds = array<i64: 2, 8, 4>}, {pipeline_mode = #tpu.pipeline_mode<synchronous>, transform_indices = @transform_1, window_bounds = array<i64: 4, 32>}, {pipeline_mode = #tpu.pipeline_mode<synchronous>, transform_indices = @transform_2, window_bounds = array<i64: 1, 32>}, {pipeline_mode = #tpu.pipeline_mode<synchronous>, transform_indices = @transform_3, window_bounds = array<i64: 8, 32>}, {pipeline_mode = #tpu.pipeline_mode<synchronous>, transform_indices = @transform_4, window_bounds = array<i64: 8, 8>}, {transform_indices = @transform_5, window_bounds = array<i64: 1, 32, 96>}, {transform_indices = @transform_6, window_bounds = array<i64: 1, 1, 96>}, {transform_indices = @transform_7, window_bounds = array<i64: 1, 32, 32>}, {transform_indices = @transform_8, window_bounds = array<i64: 1, 1, 32>}, {transform_indices = @transform_9, window_bounds = array<i64: 1, 1, 32>}, {transform_indices = @transform_10, window_bounds = array<i64: 1, 1, 32>}, {transform_indices = @transform_11, window_bounds = array<i64: 1, 32, 128>}, {transform_indices = @transform_12, window_bounds = array<i64: 1, 1, 128>}, {transform_indices = @transform_13, window_bounds = array<i64: 1, 128, 32>}, {transform_indices = @transform_14, window_bounds = array<i64: 1, 1, 32>}, {transform_indices = @transform_15, window_bounds = array<i64: 1, 1, 32>}, {transform_indices = @transform_16, window_bounds = array<i64: 1, 1, 32>}, {pipeline_mode = #tpu.pipeline_mode<synchronous>, transform_indices = @transform_17, window_bounds = array<i64: 32, 4>}, {pipeline_mode = #tpu.pipeline_mode<synchronous>, transform_indices = @transform_18, window_bounds = array<i64: 1, 4>}, {transform_indices = @transform_19, window_bounds = array<i64: 2, 8, 4>}]} {
    %c0_i32 = arith.constant 0 : i32
    %0 = arith.cmpi eq, %arg1, %c0_i32 : i32
    %1 = arith.extui %0 : i1 to i32
    %c0_i32_0 = arith.constant 0 : i32
    %2 = arith.cmpi ne, %1, %c0_i32_0 : i32
    scf.if %2 {
      %c0_69 = arith.constant 0 : index
      %c0_70 = arith.constant 0 : index
      %c0_71 = arith.constant 0 : index
      %165 = vector.load %arg2[%c0_69, %c0_70, %c0_71] : memref<2x8x4xf32, #tpu.memory_space<vmem>>, vector<2x8x4xf32>
      %166 = vector.shape_cast %165 : vector<2x8x4xf32> to vector<16x4xf32>
      %167 = arith.truncf %166 : vector<16x4xf32> to vector<16x4xbf16>
      %c0_72 = arith.constant 0 : index
      %c0_73 = arith.constant 0 : index
      %168 = vector.load %arg3[%c0_72, %c0_73] : memref<4x32xbf16, #tpu.memory_space<vmem>>, vector<4x32xbf16>
      %cst_74 = arith.constant dense<0.000000e+00> : vector<16x32xf32>
      %169 = tpu.matmul %167, %168, %cst_74 {dimension_numbers = #tpu.dot_dimension_numbers<[1], [0], [0], [1], [0, 0, 1, 1], [], []>} : vector<16x4xbf16>, vector<4x32xbf16>, vector<16x32xf32> -> vector<16x32xf32>
      %c0_75 = arith.constant 0 : index
      %c0_76 = arith.constant 0 : index
      %170 = vector.load %arg4[%c0_75, %c0_76] : memref<1x32xf32, #tpu.memory_space<vmem>>, vector<1x32xf32>
      %171 = vector.broadcast %170 : vector<1x32xf32> to vector<16x32xf32>
      %172 = arith.addf %169, %171 : vector<16x32xf32>
      %173 = vector.shape_cast %172 : vector<16x32xf32> to vector<2x8x32xf32>
      %c0_77 = arith.constant 0 : index
      %c0_78 = arith.constant 0 : index
      %174 = vector.load %arg5[%c0_77, %c0_78] : memref<8x32xf32, #tpu.memory_space<vmem>>, vector<8x32xf32>
      %175 = vector.shape_cast %174 : vector<8x32xf32> to vector<1x8x32xf32>
      %176 = vector.broadcast %175 : vector<1x8x32xf32> to vector<2x8x32xf32>
      %177 = arith.addf %173, %176 : vector<2x8x32xf32>
      %c0_79 = arith.constant 0 : index
      %c0_80 = arith.constant 0 : index
      %c0_81 = arith.constant 0 : index
      %178 = vector.load %arg22[%c0_79, %c0_80, %c0_81] : memref<2x8x32xf32, #tpu.memory_space<vmem>>, vector<2x8x32xf32>
      tpu.vector_store %arg22[%c0_79, %c0_80, %c0_81], %177 {strides = array<i32>} : memref<2x8x32xf32, #tpu.memory_space<vmem>>, vector<2x8x32xf32>,
    } else {
    }
    %c0 = arith.constant 0 : index
    %c0_1 = arith.constant 0 : index
    %c0_2 = arith.constant 0 : index
    %3 = vector.load %arg22[%c0, %c0_1, %c0_2] : memref<2x8x32xf32, #tpu.memory_space<vmem>>, vector<2x8x32xf32>
    %4 = vector.shape_cast %3 : vector<2x8x32xf32> to vector<16x32xf32>
    %5 = arith.truncf %4 : vector<16x32xf32> to vector<16x32xbf16>
    %c0_3 = arith.constant 0 : index
    %c0_4 = arith.constant 0 : index
    %c0_5 = arith.constant 0 : index
    %6 = vector.load %arg7[%c0_3, %c0_4, %c0_5] : memref<1x32x96xbf16, #tpu.memory_space<vmem>>, vector<1x32x96xbf16>
    %7 = vector.shape_cast %6 : vector<1x32x96xbf16> to vector<32x96xbf16>
    %cst = arith.constant dense<0.000000e+00> : vector<16x96xf32>
    %8 = tpu.matmul %5, %7, %cst {dimension_numbers = #tpu.dot_dimension_numbers<[1], [0], [0], [1], [0, 0, 1, 1], [], []>} : vector<16x32xbf16>, vector<32x96xbf16>, vector<16x96xf32> -> vector<16x96xf32>
    %c0_6 = arith.constant 0 : index
    %c0_7 = arith.constant 0 : index
    %c0_8 = arith.constant 0 : index
    %9 = vector.load %arg8[%c0_6, %c0_7, %c0_8] : memref<1x1x96xf32, #tpu.memory_space<vmem>>, vector<1x1x96xf32>
    %10 = vector.shape_cast %9 : vector<1x1x96xf32> to vector<1x96xf32>
    %11 = vector.broadcast %10 : vector<1x96xf32> to vector<16x96xf32>
    %12 = arith.addf %8, %11 : vector<16x96xf32>
    %c0_9 = arith.constant 0 : index
    %c0_10 = arith.constant 0 : index
    %13 = vector.load %arg6[%c0_9, %c0_10] : memref<8x8xf32, #tpu.memory_space<vmem>>, vector<8x8xf32>
    %14 = vector.shape_cast %13 : vector<8x8xf32> to vector<1x8x8xf32>
    %15 = vector.extract_strided_slice %12 {offsets = [0, 0], sizes = [8, 96], strides = [1, 1]} : vector<16x96xf32> to vector<8x96xf32>
    %16 = vector.extract_strided_slice %15 {offsets = [0, 0], sizes = [8, 32], strides = [1, 1]} : vector<8x96xf32> to vector<8x32xf32>
    %17 = vector.shape_cast %16 : vector<8x32xf32> to vector<8x4x8xf32>
    %18 = tpu.transpose %17, [1, 0, 2] : vector<8x4x8xf32> -> vector<4x8x8xf32>
    %19 = vector.extract_strided_slice %15 {offsets = [0, 32], sizes = [8, 32], strides = [1, 1]} : vector<8x96xf32> to vector<8x32xf32>
    %20 = vector.shape_cast %19 : vector<8x32xf32> to vector<8x4x8xf32>
    %21 = tpu.transpose %20, [1, 0, 2] : vector<8x4x8xf32> -> vector<4x8x8xf32>
    %22 = vector.extract_strided_slice %15 {offsets = [0, 64], sizes = [8, 32], strides = [1, 1]} : vector<8x96xf32> to vector<8x32xf32>
    %23 = vector.shape_cast %22 : vector<8x32xf32> to vector<8x4x8xf32>
    %24 = tpu.transpose %23, [1, 0, 2] : vector<8x4x8xf32> -> vector<4x8x8xf32>
    %25 = arith.truncf %18 : vector<4x8x8xf32> to vector<4x8x8xbf16>
    %26 = arith.truncf %21 : vector<4x8x8xf32> to vector<4x8x8xbf16>
    "tpu.trace_start"() <{level = 10 : i32, message = "hqd,hkd->hqk"}> : () -> ()
    %cst_11 = arith.constant dense<0.000000e+00> : vector<4x8x8xf32>
    %27 = tpu.matmul %25, %26, %cst_11 {dimension_numbers = #tpu.dot_dimension_numbers<[2], [2], [1], [1], [0, 0, 0, 1, 1, 1], [0], [0]>} : vector<4x8x8xbf16>, vector<4x8x8xbf16>, vector<4x8x8xf32> -> vector<4x8x8xf32>
    "tpu.trace_stop"() : () -> ()
    %cst_12 = arith.constant 0.353553385 : f32
    %28 = vector.broadcast %cst_12 : f32 to vector<4x8x8xf32>
    %29 = arith.mulf %27, %28 : vector<4x8x8xf32>
    %30 = vector.broadcast %14 : vector<1x8x8xf32> to vector<4x8x8xf32>
    %31 = arith.addf %29, %30 : vector<4x8x8xf32>
    %cst_13 = arith.constant dense<0xFF800000> : vector<4x8xf32>
    %32 = vector.multi_reduction <maximumf>, %31, %cst_13 [2] : vector<4x8x8xf32> to vector<4x8xf32>
    %33 = vector.shape_cast %32 : vector<4x8xf32> to vector<4x8x1xf32>
    %34 = vector.broadcast %33 : vector<4x8x1xf32> to vector<4x8x8xf32>
    %35 = arith.subf %31, %34 : vector<4x8x8xf32>
    %36 = math.exp %35 : vector<4x8x8xf32>
    %cst_14 = arith.constant dense<0.000000e+00> : vector<4x8xf32>
    %37 = vector.multi_reduction <add>, %36, %cst_14 [2] : vector<4x8x8xf32> to vector<4x8xf32>
    %38 = vector.shape_cast %37 : vector<4x8xf32> to vector<4x8x1xf32>
    %39 = tpu.reciprocal %38 {approx = true} : vector<4x8x1xf32> -> vector<4x8x1xf32>
    %40 = vector.broadcast %39 : vector<4x8x1xf32> to vector<4x8x8xf32>
    %41 = arith.mulf %36, %40 : vector<4x8x8xf32>
    %42 = arith.truncf %41 : vector<4x8x8xf32> to vector<4x8x8xbf16>
    %43 = arith.truncf %24 : vector<4x8x8xf32> to vector<4x8x8xbf16>
    "tpu.trace_start"() <{level = 10 : i32, message = "hqk,hkd->hqd"}> : () -> ()
    %cst_15 = arith.constant dense<0.000000e+00> : vector<4x8x8xf32>
    %44 = tpu.matmul %42, %43, %cst_15 {dimension_numbers = #tpu.dot_dimension_numbers<[2], [1], [1], [2], [0, 0, 0, 1, 1, 2], [0], [0]>} : vector<4x8x8xbf16>, vector<4x8x8xbf16>, vector<4x8x8xf32> -> vector<4x8x8xf32>
    "tpu.trace_stop"() : () -> ()
    %45 = tpu.transpose %44, [1, 0, 2] : vector<4x8x8xf32> -> vector<8x4x8xf32>
    %46 = vector.shape_cast %45 : vector<8x4x8xf32> to vector<8x32xf32>
    %47 = vector.extract_strided_slice %12 {offsets = [8, 0], sizes = [8, 96], strides = [1, 1]} : vector<16x96xf32> to vector<8x96xf32>
    %48 = vector.extract_strided_slice %47 {offsets = [0, 0], sizes = [8, 32], strides = [1, 1]} : vector<8x96xf32> to vector<8x32xf32>
    %49 = vector.shape_cast %48 : vector<8x32xf32> to vector<8x4x8xf32>
    %50 = tpu.transpose %49, [1, 0, 2] : vector<8x4x8xf32> -> vector<4x8x8xf32>
    %51 = vector.extract_strided_slice %47 {offsets = [0, 32], sizes = [8, 32], strides = [1, 1]} : vector<8x96xf32> to vector<8x32xf32>
    %52 = vector.shape_cast %51 : vector<8x32xf32> to vector<8x4x8xf32>
    %53 = tpu.transpose %52, [1, 0, 2] : vector<8x4x8xf32> -> vector<4x8x8xf32>
    %54 = vector.extract_strided_slice %47 {offsets = [0, 64], sizes = [8, 32], strides = [1, 1]} : vector<8x96xf32> to vector<8x32xf32>
    %55 = vector.shape_cast %54 : vector<8x32xf32> to vector<8x4x8xf32>
    %56 = tpu.transpose %55, [1, 0, 2] : vector<8x4x8xf32> -> vector<4x8x8xf32>
    %57 = arith.truncf %50 : vector<4x8x8xf32> to vector<4x8x8xbf16>
    %58 = arith.truncf %53 : vector<4x8x8xf32> to vector<4x8x8xbf16>
    "tpu.trace_start"() <{level = 10 : i32, message = "hqd,hkd->hqk"}> : () -> ()
    %cst_16 = arith.constant dense<0.000000e+00> : vector<4x8x8xf32>
    %59 = tpu.matmul %57, %58, %cst_16 {dimension_numbers = #tpu.dot_dimension_numbers<[2], [2], [1], [1], [0, 0, 0, 1, 1, 1], [0], [0]>} : vector<4x8x8xbf16>, vector<4x8x8xbf16>, vector<4x8x8xf32> -> vector<4x8x8xf32>
    "tpu.trace_stop"() : () -> ()
    %cst_17 = arith.constant 0.353553385 : f32
    %60 = vector.broadcast %cst_17 : f32 to vector<4x8x8xf32>
    %61 = arith.mulf %59, %60 : vector<4x8x8xf32>
    %62 = vector.broadcast %14 : vector<1x8x8xf32> to vector<4x8x8xf32>
    %63 = arith.addf %61, %62 : vector<4x8x8xf32>
    %cst_18 = arith.constant dense<0xFF800000> : vector<4x8xf32>
    %64 = vector.multi_reduction <maximumf>, %63, %cst_18 [2] : vector<4x8x8xf32> to vector<4x8xf32>
    %65 = vector.shape_cast %64 : vector<4x8xf32> to vector<4x8x1xf32>
    %66 = vector.broadcast %65 : vector<4x8x1xf32> to vector<4x8x8xf32>
    %67 = arith.subf %63, %66 : vector<4x8x8xf32>
    %68 = math.exp %67 : vector<4x8x8xf32>
    %cst_19 = arith.constant dense<0.000000e+00> : vector<4x8xf32>
    %69 = vector.multi_reduction <add>, %68, %cst_19 [2] : vector<4x8x8xf32> to vector<4x8xf32>
    %70 = vector.shape_cast %69 : vector<4x8xf32> to vector<4x8x1xf32>
    %71 = tpu.reciprocal %70 {approx = true} : vector<4x8x1xf32> -> vector<4x8x1xf32>
    %72 = vector.broadcast %71 : vector<4x8x1xf32> to vector<4x8x8xf32>
    %73 = arith.mulf %68, %72 : vector<4x8x8xf32>
    %74 = arith.truncf %73 : vector<4x8x8xf32> to vector<4x8x8xbf16>
    %75 = arith.truncf %56 : vector<4x8x8xf32> to vector<4x8x8xbf16>
    "tpu.trace_start"() <{level = 10 : i32, message = "hqk,hkd->hqd"}> : () -> ()
    %cst_20 = arith.constant dense<0.000000e+00> : vector<4x8x8xf32>
    %76 = tpu.matmul %74, %75, %cst_20 {dimension_numbers = #tpu.dot_dimension_numbers<[2], [1], [1], [2], [0, 0, 0, 1, 1, 2], [0], [0]>} : vector<4x8x8xbf16>, vector<4x8x8xbf16>, vector<4x8x8xf32> -> vector<4x8x8xf32>
    "tpu.trace_stop"() : () -> ()
    %77 = tpu.transpose %76, [1, 0, 2] : vector<4x8x8xf32> -> vector<8x4x8xf32>
    %78 = vector.shape_cast %77 : vector<8x4x8xf32> to vector<8x32xf32>
    %79 = tpu.concatenate %46, %78 in 0 : vector<8x32xf32>, vector<8x32xf32> -> vector<16x32xf32>
    %80 = arith.truncf %79 : vector<16x32xf32> to vector<16x32xbf16>
    %c0_21 = arith.constant 0 : index
    %c0_22 = arith.constant 0 : index
    %c0_23 = arith.constant 0 : index
    %81 = vector.load %arg9[%c0_21, %c0_22, %c0_23] : memref<1x32x32xbf16, #tpu.memory_space<vmem>>, vector<1x32x32xbf16>
    %82 = vector.shape_cast %81 : vector<1x32x32xbf16> to vector<32x32xbf16>
    %cst_24 = arith.constant dense<0.000000e+00> : vector<16x32xf32>
    %83 = tpu.matmul %80, %82, %cst_24 {dimension_numbers = #tpu.dot_dimension_numbers<[1], [0], [0], [1], [0, 0, 1, 1], [], []>} : vector<16x32xbf16>, vector<32x32xbf16>, vector<16x32xf32> -> vector<16x32xf32>
    %c0_25 = arith.constant 0 : index
    %c0_26 = arith.constant 0 : index
    %c0_27 = arith.constant 0 : index
    %84 = vector.load %arg10[%c0_25, %c0_26, %c0_27] : memref<1x1x32xf32, #tpu.memory_space<vmem>>, vector<1x1x32xf32>
    %85 = vector.shape_cast %84 : vector<1x1x32xf32> to vector<1x32xf32>
    %86 = vector.broadcast %85 : vector<1x32xf32> to vector<16x32xf32>
    %87 = arith.addf %83, %86 : vector<16x32xf32>
    %88 = arith.addf %4, %87 : vector<16x32xf32>
    %c0_28 = arith.constant 0 : index
    %c0_29 = arith.constant 0 : index
    %c0_30 = arith.constant 0 : index
    %89 = vector.load %arg11[%c0_28, %c0_29, %c0_30] : memref<1x1x32xf32, #tpu.memory_space<vmem>>, vector<1x1x32xf32>
    %90 = vector.shape_cast %89 : vector<1x1x32xf32> to vector<1x32xf32>
    %c0_31 = arith.constant 0 : index
    %c0_32 = arith.constant 0 : index
    %c0_33 = arith.constant 0 : index
    %91 = vector.load %arg12[%c0_31, %c0_32, %c0_33] : memref<1x1x32xf32, #tpu.memory_space<vmem>>, vector<1x1x32xf32>
    %92 = vector.shape_cast %91 : vector<1x1x32xf32> to vector<1x32xf32>
    %cst_34 = arith.constant dense<0.000000e+00> : vector<16xf32>
    %93 = vector.multi_reduction <add>, %88, %cst_34 [1] : vector<16x32xf32> to vector<16xf32>
    %94 = vector.shape_cast %93 : vector<16xf32> to vector<16x1xf32>
    %cst_35 = arith.constant 3.200000e+01 : f32
    %95 = vector.broadcast %cst_35 : f32 to vector<16x1xf32>
    %96 = arith.divf %94, %95 : vector<16x1xf32>
    %97 = vector.broadcast %96 : vector<16x1xf32> to vector<16x32xf32>
    %98 = arith.subf %88, %97 : vector<16x32xf32>
    %99 = arith.mulf %98, %98 : vector<16x32xf32>
    %cst_36 = arith.constant dense<0.000000e+00> : vector<16xf32>
    %100 = vector.multi_reduction <add>, %99, %cst_36 [1] : vector<16x32xf32> to vector<16xf32>
    %101 = vector.shape_cast %100 : vector<16xf32> to vector<16x1xf32>
    %cst_37 = arith.constant 3.200000e+01 : f32
    %102 = vector.broadcast %cst_37 : f32 to vector<16x1xf32>
    %103 = arith.divf %101, %102 : vector<16x1xf32>
    %104 = vector.broadcast %96 : vector<16x1xf32> to vector<16x32xf32>
    %105 = arith.subf %88, %104 : vector<16x32xf32>
    %cst_38 = arith.constant 9.99999974E-6 : f32
    %106 = vector.broadcast %cst_38 : f32 to vector<16x1xf32>
    %107 = arith.addf %103, %106 : vector<16x1xf32>
    %108 = math.rsqrt %107 : vector<16x1xf32>
    %109 = vector.broadcast %108 : vector<16x1xf32> to vector<16x32xf32>
    %110 = arith.mulf %105, %109 : vector<16x32xf32>
    %111 = vector.broadcast %90 : vector<1x32xf32> to vector<16x32xf32>
    %112 = arith.mulf %110, %111 : vector<16x32xf32>
    %113 = vector.broadcast %92 : vector<1x32xf32> to vector<16x32xf32>
    %114 = arith.addf %112, %113 : vector<16x32xf32>
    %115 = arith.truncf %114 : vector<16x32xf32> to vector<16x32xbf16>
    %c0_39 = arith.constant 0 : index
    %c0_40 = arith.constant 0 : index
    %c0_41 = arith.constant 0 : index
    %116 = vector.load %arg13[%c0_39, %c0_40, %c0_41] : memref<1x32x128xbf16, #tpu.memory_space<vmem>>, vector<1x32x128xbf16>
    %117 = vector.shape_cast %116 : vector<1x32x128xbf16> to vector<32x128xbf16>
    %cst_42 = arith.constant dense<0.000000e+00> : vector<16x128xf32>
    %118 = tpu.matmul %115, %117, %cst_42 {dimension_numbers = #tpu.dot_dimension_numbers<[1], [0], [0], [1], [0, 0, 1, 1], [], []>} : vector<16x32xbf16>, vector<32x128xbf16>, vector<16x128xf32> -> vector<16x128xf32>
    %c0_43 = arith.constant 0 : index
    %c0_44 = arith.constant 0 : index
    %c0_45 = arith.constant 0 : index
    %119 = vector.load %arg14[%c0_43, %c0_44, %c0_45] : memref<1x1x128xf32, #tpu.memory_space<vmem>>, vector<1x1x128xf32>
    %120 = vector.shape_cast %119 : vector<1x1x128xf32> to vector<1x128xf32>
    %121 = vector.broadcast %120 : vector<1x128xf32> to vector<16x128xf32>
    %122 = arith.addf %118, %121 : vector<16x128xf32>
    %cst_46 = arith.constant 0.000000e+00 : f32
    %123 = vector.broadcast %cst_46 : f32 to vector<16x128xf32>
    %124 = arith.maximumf %122, %123 : vector<16x128xf32>
    %125 = arith.truncf %124 : vector<16x128xf32> to vector<16x128xbf16>
    %c0_47 = arith.constant 0 : index
    %c0_48 = arith.constant 0 : index
    %c0_49 = arith.constant 0 : index
    %126 = vector.load %arg15[%c0_47, %c0_48, %c0_49] : memref<1x128x32xbf16, #tpu.memory_space<vmem>>, vector<1x128x32xbf16>
    %127 = vector.shape_cast %126 : vector<1x128x32xbf16> to vector<128x32xbf16>
    %cst_50 = arith.constant dense<0.000000e+00> : vector<16x32xf32>
    %128 = tpu.matmul %125, %127, %cst_50 {dimension_numbers = #tpu.dot_dimension_numbers<[1], [0], [0], [1], [0, 0, 1, 1], [], []>} : vector<16x128xbf16>, vector<128x32xbf16>, vector<16x32xf32> -> vector<16x32xf32>
    %c0_51 = arith.constant 0 : index
    %c0_52 = arith.constant 0 : index
    %c0_53 = arith.constant 0 : index
    %129 = vector.load %arg16[%c0_51, %c0_52, %c0_53] : memref<1x1x32xf32, #tpu.memory_space<vmem>>, vector<1x1x32xf32>
    %130 = vector.shape_cast %129 : vector<1x1x32xf32> to vector<1x32xf32>
    %131 = vector.broadcast %130 : vector<1x32xf32> to vector<16x32xf32>
    %132 = arith.addf %128, %131 : vector<16x32xf32>
    %133 = arith.addf %114, %132 : vector<16x32xf32>
    %c0_54 = arith.constant 0 : index
    %c0_55 = arith.constant 0 : index
    %c0_56 = arith.constant 0 : index
    %134 = vector.load %arg17[%c0_54, %c0_55, %c0_56] : memref<1x1x32xf32, #tpu.memory_space<vmem>>, vector<1x1x32xf32>
    %135 = vector.shape_cast %134 : vector<1x1x32xf32> to vector<1x32xf32>
    %c0_57 = arith.constant 0 : index
    %c0_58 = arith.constant 0 : index
    %c0_59 = arith.constant 0 : index
    %136 = vector.load %arg18[%c0_57, %c0_58, %c0_59] : memref<1x1x32xf32, #tpu.memory_space<vmem>>, vector<1x1x32xf32>
    %137 = vector.shape_cast %136 : vector<1x1x32xf32> to vector<1x32xf32>
    %cst_60 = arith.constant dense<0.000000e+00> : vector<16xf32>
    %138 = vector.multi_reduction <add>, %133, %cst_60 [1] : vector<16x32xf32> to vector<16xf32>
    %139 = vector.shape_cast %138 : vector<16xf32> to vector<16x1xf32>
    %cst_61 = arith.constant 3.200000e+01 : f32
    %140 = vector.broadcast %cst_61 : f32 to vector<16x1xf32>
    %141 = arith.divf %139, %140 : vector<16x1xf32>
    %142 = vector.broadcast %141 : vector<16x1xf32> to vector<16x32xf32>
    %143 = arith.subf %133, %142 : vector<16x32xf32>
    %144 = arith.mulf %143, %143 : vector<16x32xf32>
    %cst_62 = arith.constant dense<0.000000e+00> : vector<16xf32>
    %145 = vector.multi_reduction <add>, %144, %cst_62 [1] : vector<16x32xf32> to vector<16xf32>
    %146 = vector.shape_cast %145 : vector<16xf32> to vector<16x1xf32>
    %cst_63 = arith.constant 3.200000e+01 : f32
    %147 = vector.broadcast %cst_63 : f32 to vector<16x1xf32>
    %148 = arith.divf %146, %147 : vector<16x1xf32>
    %149 = vector.broadcast %141 : vector<16x1xf32> to vector<16x32xf32>
    %150 = arith.subf %133, %149 : vector<16x32xf32>
    %cst_64 = arith.constant 9.99999974E-6 : f32
    %151 = vector.broadcast %cst_64 : f32 to vector<16x1xf32>
    %152 = arith.addf %148, %151 : vector<16x1xf32>
    %153 = math.rsqrt %152 : vector<16x1xf32>
    %154 = vector.broadcast %153 : vector<16x1xf32> to vector<16x32xf32>
    %155 = arith.mulf %150, %154 : vector<16x32xf32>
    %156 = vector.broadcast %135 : vector<1x32xf32> to vector<16x32xf32>
    %157 = arith.mulf %155, %156 : vector<16x32xf32>
    %158 = vector.broadcast %137 : vector<1x32xf32> to vector<16x32xf32>
    %159 = arith.addf %157, %158 : vector<16x32xf32>
    %160 = vector.shape_cast %159 : vector<16x32xf32> to vector<2x8x32xf32>
    %c0_65 = arith.constant 0 : index
    %c0_66 = arith.constant 0 : index
    %c0_67 = arith.constant 0 : index
    %161 = vector.load %arg22[%c0_65, %c0_66, %c0_67] : memref<2x8x32xf32, #tpu.memory_space<vmem>>, vector<2x8x32xf32>
    tpu.vector_store %arg22[%c0_65, %c0_66, %c0_67], %160 {strides = array<i32>} : memref<2x8x32xf32, #tpu.memory_space<vmem>>, vector<2x8x32xf32>,
    %c1_i32 = arith.constant 1 : i32
    %162 = arith.cmpi eq, %arg1, %c1_i32 : i32
    %163 = arith.extui %162 : i1 to i32
    %c0_i32_68 = arith.constant 0 : i32
    %164 = arith.cmpi ne, %163, %c0_i32_68 : i32
    scf.if %164 {
      %165 = arith.truncf %159 : vector<16x32xf32> to vector<16x32xbf16>
      %c0_69 = arith.constant 0 : index
      %c0_70 = arith.constant 0 : index
      %166 = vector.load %arg19[%c0_69, %c0_70] : memref<32x4xbf16, #tpu.memory_space<vmem>>, vector<32x4xbf16>
      %cst_71 = arith.constant dense<0.000000e+00> : vector<16x4xf32>
      %167 = tpu.matmul %165, %166, %cst_71 {dimension_numbers = #tpu.dot_dimension_numbers<[1], [0], [0], [1], [0, 0, 1, 1], [], []>} : vector<16x32xbf16>, vector<32x4xbf16>, vector<16x4xf32> -> vector<16x4xf32>
      %c0_72 = arith.constant 0 : index
      %c0_73 = arith.constant 0 : index
      %168 = vector.load %arg20[%c0_72, %c0_73] : memref<1x4xf32, #tpu.memory_space<vmem>>, vector<1x4xf32>
      %169 = vector.broadcast %168 : vector<1x4xf32> to vector<16x4xf32>
      %170 = arith.addf %167, %169 : vector<16x4xf32>
      %171 = vector.shape_cast %170 : vector<16x4xf32> to vector<2x8x4xf32>
      %c0_74 = arith.constant 0 : index
      %c0_75 = arith.constant 0 : index
      %c0_76 = arith.constant 0 : index
      %172 = vector.load %arg21[%c0_74, %c0_75, %c0_76] : memref<2x8x4xf32, #tpu.memory_space<vmem>>, vector<2x8x4xf32>
      tpu.vector_store %arg21[%c0_74, %c0_75, %c0_76], %171 {strides = array<i32>} : memref<2x8x4xf32, #tpu.memory_space<vmem>>, vector<2x8x4xf32>,
    } else {
    }
    return
  }
  func.func @transform_0(%arg0: i32, %arg1: i32) -> (i32, i32, i32) {
    %c0_i32 = arith.constant 0 : i32
    %c0_i32_0 = arith.constant 0 : i32
    %c0_i32_1 = arith.constant 0 : i32
    return %arg0, %c0_i32, %c0_i32_0 : i32, i32, i32
  }
  func.func @transform_1(%arg0: i32, %arg1: i32) -> (i32, i32) {
    %c0_i32 = arith.constant 0 : i32
    %c0_i32_0 = arith.constant 0 : i32
    %c0_i32_1 = arith.constant 0 : i32
    return %c0_i32, %c0_i32_0 : i32, i32
  }
  func.func @transform_2(%arg0: i32, %arg1: i32) -> (i32, i32) {
    %c0_i32 = arith.constant 0 : i32
    %c0_i32_0 = arith.constant 0 : i32
    %c0_i32_1 = arith.constant 0 : i32
    return %c0_i32, %c0_i32_0 : i32, i32
  }
  func.func @transform_3(%arg0: i32, %arg1: i32) -> (i32, i32) {
    %c0_i32 = arith.constant 0 : i32
    %c0_i32_0 = arith.constant 0 : i32
    %c0_i32_1 = arith.constant 0 : i32
    return %c0_i32, %c0_i32_0 : i32, i32
  }
  func.func @transform_4(%arg0: i32, %arg1: i32) -> (i32, i32) {
    %c0_i32 = arith.constant 0 : i32
    %c0_i32_0 = arith.constant 0 : i32
    %c0_i32_1 = arith.constant 0 : i32
    return %c0_i32, %c0_i32_0 : i32, i32
  }
  func.func @transform_5(%arg0: i32, %arg1: i32) -> (i32, i32, i32) {
    %c0_i32 = arith.constant 0 : i32
    %c0_i32_0 = arith.constant 0 : i32
    %c0_i32_1 = arith.constant 0 : i32
    return %arg1, %c0_i32, %c0_i32_0 : i32, i32, i32
  }
  func.func @transform_6(%arg0: i32, %arg1: i32) -> (i32, i32, i32) {
    %c0_i32 = arith.constant 0 : i32
    %c0_i32_0 = arith.constant 0 : i32
    %c0_i32_1 = arith.constant 0 : i32
    return %arg1, %c0_i32, %c0_i32_0 : i32, i32, i32
  }
  func.func @transform_7(%arg0: i32, %arg1: i32) -> (i32, i32, i32) {
    %c0_i32 = arith.constant 0 : i32
    %c0_i32_0 = arith.constant 0 : i32
    %c0_i32_1 = arith.constant 0 : i32
    return %arg1, %c0_i32, %c0_i32_0 : i32, i32, i32
  }
  func.func @transform_8(%arg0: i32, %arg1: i32) -> (i32, i32, i32) {
    %c0_i32 = arith.constant 0 : i32
    %c0_i32_0 = arith.constant 0 : i32
    %c0_i32_1 = arith.constant 0 : i32
    return %arg1, %c0_i32, %c0_i32_0 : i32, i32, i32
  }
  func.func @transform_9(%arg0: i32, %arg1: i32) -> (i32, i32, i32) {
    %c0_i32 = arith.constant 0 : i32
    %c0_i32_0 = arith.constant 0 : i32
    %c0_i32_1 = arith.constant 0 : i32
    return %arg1, %c0_i32, %c0_i32_0 : i32, i32, i32
  }
  func.func @transform_10(%arg0: i32, %arg1: i32) -> (i32, i32, i32) {
    %c0_i32 = arith.constant 0 : i32
    %c0_i32_0 = arith.constant 0 : i32
    %c0_i32_1 = arith.constant 0 : i32
    return %arg1, %c0_i32, %c0_i32_0 : i32, i32, i32
  }
  func.func @transform_11(%arg0: i32, %arg1: i32) -> (i32, i32, i32) {
    %c0_i32 = arith.constant 0 : i32
    %c0_i32_0 = arith.constant 0 : i32
    %c0_i32_1 = arith.constant 0 : i32
    return %arg1, %c0_i32, %c0_i32_0 : i32, i32, i32
  }
  func.func @transform_12(%arg0: i32, %arg1: i32) -> (i32, i32, i32) {
    %c0_i32 = arith.constant 0 : i32
    %c0_i32_0 = arith.constant 0 : i32
    %c0_i32_1 = arith.constant 0 : i32
    return %arg1, %c0_i32, %c0_i32_0 : i32, i32, i32
  }
  func.func @transform_13(%arg0: i32, %arg1: i32) -> (i32, i32, i32) {
    %c0_i32 = arith.constant 0 : i32
    %c0_i32_0 = arith.constant 0 : i32
    %c0_i32_1 = arith.constant 0 : i32
    return %arg1, %c0_i32, %c0_i32_0 : i32, i32, i32
  }
  func.func @transform_14(%arg0: i32, %arg1: i32) -> (i32, i32, i32) {
    %c0_i32 = arith.constant 0 : i32
    %c0_i32_0 = arith.constant 0 : i32
    %c0_i32_1 = arith.constant 0 : i32
    return %arg1, %c0_i32, %c0_i32_0 : i32, i32, i32
  }
  func.func @transform_15(%arg0: i32, %arg1: i32) -> (i32, i32, i32) {
    %c0_i32 = arith.constant 0 : i32
    %c0_i32_0 = arith.constant 0 : i32
    %c0_i32_1 = arith.constant 0 : i32
    return %arg1, %c0_i32, %c0_i32_0 : i32, i32, i32
  }
  func.func @transform_16(%arg0: i32, %arg1: i32) -> (i32, i32, i32) {
    %c0_i32 = arith.constant 0 : i32
    %c0_i32_0 = arith.constant 0 : i32
    %c0_i32_1 = arith.constant 0 : i32
    return %arg1, %c0_i32, %c0_i32_0 : i32, i32, i32
  }
  func.func @transform_17(%arg0: i32, %arg1: i32) -> (i32, i32) {
    %c0_i32 = arith.constant 0 : i32
    %c0_i32_0 = arith.constant 0 : i32
    %c0_i32_1 = arith.constant 0 : i32
    return %c0_i32, %c0_i32_0 : i32, i32
  }
  func.func @transform_18(%arg0: i32, %arg1: i32) -> (i32, i32) {
    %c0_i32 = arith.constant 0 : i32
    %c0_i32_0 = arith.constant 0 : i32
    %c0_i32_1 = arith.constant 0 : i32
    return %c0_i32, %c0_i32_0 : i32, i32
  }
  func.func @transform_19(%arg0: i32, %arg1: i32) -> (i32, i32, i32) {
    %c0_i32 = arith.constant 0 : i32
    %c0_i32_0 = arith.constant 0 : i32
    %c0_i32_1 = arith.constant 0 : i32
    return %arg0, %c0_i32, %c0_i32_0 : i32, i32, i32
  }
}

</mosaic_0001>

<bundles_post_ra>
// kernel: tpu_custom_call.1
= control target key start
LH: loop header
LB: loop body
LE: loop exit
PB: predicated region body
PF: predicated region fallthrough
CT: control target
= control target key end

     0   :  { %s4171_s30 = smov 0   ;;  %s4173_s20 = smov 0   ;;  %s4757_s0 = inlined_call_operand.vmem [shape: f32[2,8,4], index: 0, kind: input, shape index: {}]   ;;  %s4758_s1 = inlined_call_operand.vmem [shape: bf16[4,32], index: 1, kind: input, shape index: {}]   ;;  %s4759_s2 = inlined_call_operand.vmem [shape: f32[1,32], index: 2, kind: input, shape index: {}]   ;;  %s4760_s3 = inlined_call_operand.vmem [shape: f32[8,32], index: 3, kind: input, shape index: {}]   ;;  %s4761_s4 = inlined_call_operand.vmem [shape: f32[8,8], index: 4, kind: input, shape index: {}]   ;;  %s4762_s5 = inlined_call_operand.vmem [shape: bf16[2,32,96], index: 5, kind: input, shape index: {}]   ;;  %s4763_s6 = inlined_call_operand.vmem [shape: f32[2,1,96], index: 6, kind: input, shape index: {}]   ;;  %s4764_s7 = inlined_call_operand.vmem [shape: bf16[2,32,32], index: 7, kind: input, shape index: {}]   ;;  %s4765_s8 = inlined_call_operand.vmem [shape: f32[2,1,32], index: 8, kind: input, shape index: {}]   ;;  %s4766_s9 = inlined_call_operand.vmem [shape: f32[2,1,32], index: 9, kind: input, shape index: {}]   ;;  %s4767_s10 = inlined_call_operand.vmem [shape: f32[2,1,32], index: 10, kind: input, shape index: {}]   ;;  %s4768_s11 = inlined_call_operand.vmem [shape: bf16[2,32,128], index: 11, kind: input, shape index: {}]   ;;  %s4769_s12 = inlined_call_operand.vmem [shape: f32[2,1,128], index: 12, kind: input, shape index: {}]   ;;  %s4770_s13 = inlined_call_operand.vmem [shape: bf16[2,128,32], index: 13, kind: input, shape index: {}]   ;;  %s4771_s14 = inlined_call_operand.vmem [shape: f32[2,1,32], index: 14, kind: input, shape index: {}]   ;;  %s4772_s15 = inlined_call_operand.vmem [shape: f32[2,1,32], index: 15, kind: input, shape index: {}]   ;;  %s4773_s16 = inlined_call_operand.vmem [shape: f32[2,1,32], index: 16, kind: input, shape index: {}]   ;;  %s4774_s17 = inlined_call_operand.vmem [shape: bf16[32,4], index: 17, kind: input, shape index: {}]   ;;  %s4775_s18 = inlined_call_operand.vmem [shape: f32[1,4], index: 18, kind: input, shape index: {}]   ;;  %s4776_s19 = inlined_call_operand.vmem [shape: f32[2,8,4], index: 19, kind: output, shape index: {}]  }
   0x1   :  { %4783 = sst [smem:[#allocation7_spill]] %s4757_s0  ;;  %s4169_s0 = smov 0  }
   0x2   :  { %4784 = sst [smem:[#allocation8_spill]] %s4758_s1 }
   0x3   :  { %4785 = sst [smem:[#allocation9_spill]] %s4759_s2 }
   0x4   :  { %4786 = sst [smem:[#allocation10_spill]] %s4760_s3 }
   0x5   :  { %4787 = sst [smem:[#allocation11_spill]] %s4762_s5 }
   0x6   :  { %4788 = sst [smem:[#allocation12_spill]] %s4764_s7 }
   0x7   :  { %4789 = sst [smem:[#allocation13_spill]] %s4774_s17 }
   0x8   :  { %4790 = sst [smem:[#allocation14_spill]] %s4775_s18 }
   0x9   :  { %4791 = sst [smem:[#allocation15_spill]] %s4776_s19 }
   0xa LB: > { %4792 = sst [smem:[#allocation3_spill]] %s4047_s30  ;;  %s38_s21 = sadd.s32 1, %s4047_s30  ;;  %s4051_s20 = sphi %s4173_s20, %s29_s20   ;;  %s4047_s30 = sphi %s4171_s30, %s4813_s30   ;;  %s4043_s0 = sphi %s4169_s0, %s4812_s0  }
   0xb   : > { %4793 = sst [smem:[#allocation4_spill]] %s4051_s20  ;;  %p3625_p0 = scmp.ge.s32.totalorder %s4051_s20, 1 }
   0xc   : > { %p39_p1 = scmp.ge.s32.totalorder %s38_s21, 2  ;;  %p654_p2 = scmp.lt.s32.totalorder %s4051_s20, 3 }
   0xe   : > { %s4815_s21 = smov (%p39_p1, %s38_s21), 0  ;;  %p655_p3 = pnand %p3625_p0, %p654_p2 }
   0xf   : > { %4794 = sst [smem:[#allocation5_spill]] %s4815_s21 }
  0x10   : > { %658 = sbr.rel (%p655_p3) target bundleno = 3803 (0xedb), region = 96 }
  0x17   : > { %p760_p4 = scmp.lt.s32.totalorder %s4043_s0, 1  ;;  %s4795_s5 = sld [smem:[#allocation11_spill]] }
  0x18   : > { %s4796_s7 = sld [smem:[#allocation12_spill]]  ;;  %p3634_p5 = scmp.ne.s32.totalorder %s4043_s0, 0 }
  0x19   : > { %s4191_s1 = scalar_select %p760_p4, %s4043_s0, 1 }
  0x1a   : > { %814 = sbr.rel (%p3634_p5) target bundleno = 260 (0x104), region = 100  ;;  %s4798_s30 = sld [smem:[#allocation8_spill]] (!%p3634_p5)  ;;  %vm830_vm0 = vcmask (!%p3634_p5), 1041408   ;;  %v4053_v2 = vmov (!%p3634_p5), 0.0   ;;  %vm4054_vm1 = vmmov (!%p3634_p5), 0   ;;  %vm826_vm2 = vcmask (!%p3634_p5), 31744  }
  0x1b   : > { %s3703_s22 = sshll.u32 %s4191_s1, 4  ;;  %s797_s2 = scalar_lea.vmem %s4771_s14, %s4191_s1  ;;  %3762 = vmatprep.subr.bf16.mxu0 (!%p3634_p5), %v4053_v2  ;;  %3764 = vmatprep.mubr.msk.bf16.mxu0 (!%p3634_p5), %vm4054_vm1, %v4053_v2  ;;  %vm878_vm3 = vcmask (!%p3634_p5), 261120  }
  0x1c   : > { %s800_s25 = scalar_lea.vmem %s4772_s15, %s4191_s1  ;;  %s803_s17 = scalar_lea.vmem %s4773_s16, %s4191_s1 }
  0x1d   : > { %s4201_s26 = scalar_lea.vmem %s4795_s5, %s3703_s22  ;;  %s4223_s5 = scalar_lea.vmem %s4768_s11, %s3703_s22 }
  0x1e   : > { %s4206_s29 = scalar_lea.vmem %s4796_s7, %s3703_s22  ;;  %s789_s7 = scalar_lea.vmem %s4769_s12, %s4191_s1 }
  0x1f   : > { %4797 = sst [smem:[#allocation6_spill]] %s4206_s29  ;;  %s3706_s29 = sshll.u32 %s4191_s1, 6 }
  0x20   : > { %s4233_s20 = scalar_lea.vmem %s4770_s13, %s3706_s29  ;;  %v818_v0 = vld [vmem:[%s4798_s30] sm:$0x3] (!%p3634_p5)  ;;  %s4799_s18 = sld [smem:[#allocation7_spill]] (!%p3634_p5) }
  0x21   : > { %v832_v3 = vsel %vm830_vm0, %v818_v0, 0  ;;  %s4800_s3 = sld [smem:[#allocation9_spill]]  ;;  %s4801_s30 = sld [smem:[#allocation10_spill]] }
  0x22   : > { %3763 = vmatpush3.bf16.msra.mxu0 %v832_v3 }
  0x26   : > { %v815_v1 = vld [vmem:[%s4799_s18] sm:$0xff]  ;;  %v816_v4 = vld [vmem:[%s4799_s18 + $0x8] sm:$0xff] }
  0x27   : > { %v817_v5 = vpack.c.bf16 %v816_v4, %v815_v1  ;;  %v3635_v6 = vld [vmem:[%s4800_s3] ss:$0 sm:$0xff] }
  0x28   : > { %v875_v8 = vld [vmem:[%s4801_s30] sm:$0xff] }
  0x29   : > { %3765 = vmatmul.mubr.msk.bf16.vlgmr.msra.gmra.mrb[0].mxu0 %vm826_vm2, %v817_v5 }
  0xfc   : > { %v868_v7 = vpop.f32.mrb[0].mxu0 }
  0xfd   : > { %v869_v9 = vadd.f32 %v3635_v6, %v868_v7  ;;  %v3766_v10 = vpop.f32.mrb[1].mxu0 }
  0xfe   : > { %v871_v11 = vpop.f32.mrb[2].mxu0 }
  0xff   : > { %v876_v12 = vadd.f32 %v875_v8, %v869_v9  ;;  %v872_v13 = vadd.f32 %v3635_v6, %v871_v11  ;;  %v3767_v14 = vpop.f32.mrb[3].mxu0 }
 0x101   : > { %879 = vst.msk [vmem:[#allocation2] sm:$0xff] %vm878_vm3, %v876_v12  ;;  %v877_v15 = vadd.f32 %v875_v8, %v872_v13 }
 0x103   : > { %880 = vst.msk [vmem:[#allocation2 + $0x8] sm:$0xff] %vm878_vm3, %v877_v15 }
 0x104 PF: > { %v3971_v16 = vld [vmem:[%s4201_s26] sm:$0xff]   ;;  %v4055_v17 = vmov 0.0   ;;  %v3972_v18 = vld [vmem:[%s4201_s26 + $0x8] sm:$0xff]   ;;  %vm4056_vm4 = vmmov 0   ;;  %vm907_vm5 = vcmask 261120   ;;  %s4802_s21 = scalar_lea.vmem %s4763_s6, %s4191_s1  ;;  %s4057_s24 = smov 104   ;;  %v968_v34 = vlaneseq }
 0x105   : > { %3768 = vmatprep.subr.bf16.mxu0 %v4055_v17  ;;  %3788 = vmatprep.subr.bf16.mxu1 %v4055_v17  ;;  %v3637_v22 = vld [vmem:[%s4802_s21] ss:$0 sm:$0xff]  ;;  %s4058_s19 = smov 120   ;;  %s4059_s23 = smov 96   ;;  %v4061_v32 = vmov 1983009808  }
 0x106   : > { %3769 = vmatpush3.bf16.msra.mxu0 %v3971_v16  ;;  %3772 = vmatprep.mubr.msk.bf16.mxu0 %vm4056_vm4, %v4055_v17  ;;  %s4060_s22 = smov 112   ;;  %v966_v33 = vunpack.c.l.s4 %v4061_v32  ;;  %v969_v36 = vshrl.u32 %v968_v34, 7  ;;  %v4062_v37 = vmov 1934713408   ;;  %vm1403_vm6 = vcmask 64512   ;;  %s4063_s28 = smov 64  }
 0x107   : > { %3770 = vmatprep.subr.bf16.mxu0 %v4055_v17  ;;  %3790 = vmatprep.mubr.msk.bf16.mxu1 %vm4056_vm4, %v4055_v17  ;;  %v998_v38 = vunpack.c.l.s4 %v4062_v37  ;;  %vm1651_vm7 = vcmask 1043456   ;;  %s4803_s30 = sld [smem:[#allocation6_spill]]  ;;  %s4064_s26 = smov 16   ;;  %vm1982_vm8 = vcmask 130048   ;;  %vm1984_vm9 = vcmask 195584  }
 0x108   : > { %v881_v19 = vld [vmem:[#allocation2] sm:$0xff]  ;;  %v967_v35 = vunpack.c.0.s8 %v966_v33  ;;  %s4065_s29 = smov 8   ;;  %s4066_s21 = smov 24  }
 0x109   : > { %v999_v44 = vunpack.c.0.s8 %v998_v38  ;;  %s4805_s3 = scalar_lea.vmem %s4766_s9, %s4191_s1  ;;  %p3694_p6 = scmp.ne.s32.totalorder %s4043_s0, 1 }
 0x10a   : > { %v882_v20 = vld [vmem:[#allocation2 + $0x8] sm:$0xff]  ;;  %3771 = vmatpush3.bf16.msra.mxu0 %v3972_v18  ;;  %v4309_v41 = vsub.s32 %v967_v35, %v969_v36  ;;  %vm4068_vm10 = vmmov (!%p3694_p6), 0   ;;  %vm3433_vm11 = vcmask (!%p3694_p6), 31744  }
 0x10b   : > { %v883_v21 = vpack.c.bf16 %v882_v20, %v881_v19  ;;  %3776 = vmatprep.subr.bf16.mxu0 %v4055_v17  ;;  %v4319_v51 = vsub.s32 %v999_v44, %v969_v36 }
 0x10d   : > { %3773 = vmatmul.mubr.msk.bf16.vlgmr.msra.gmra.mrb[0].mxu0 %vm907_vm5, %v883_v21 }
 0x10e   : > { %3778 = vmatprep.mubr.msk.bf16.mxu0 %vm4056_vm4, %v4055_v17 }
 0x1e0   : > { %v945_v23 = vpop.f32.mrb[0].mxu0 }
 0x1e1   : > { %v4281_v24 = vadd.f32 %v3637_v22, %v945_v23  ;;  %v3774_v25 = vpop.f32.mrb[1].mxu0 }
 0x1e2   : > { %v948_v26 = vpop.f32.mrb[2].mxu0 }
 0x1e3   : > { %v4283_v27 = vadd.f32 %v3637_v22, %v948_v26  ;;  %960 = vrot.lane.b32.xlu1 %v4281_v24, %s4057_s24  ;;  %954 = vrot.lane.b32.xlu0 %v4281_v24, %s4058_s19  ;;  %v3775_v28 = vpop.f32.mrb[3].mxu0 }
 0x1e7   : > { %1099 = vrot.lane.b32.xlu1 %v4281_v24, %s4059_s23  ;;  %957 = vrot.lane.b32.xlu0 %v4281_v24, %s4060_s22 }
 0x255   : > { %v4293_v29 = vpop.permute.xlu0 %954  ;;  %v4297_v30 = vpop.permute.xlu1 %960 }
 0x256   : > { %1101 = vrot.lane.b32.xlu0 %v4293_v29, %s4059_s23  ;;  %v979_v42 = vcombine.low %v4293_v29, %v4297_v30  ;;  %v980_v43 = vcombine.high %v4293_v29, %v4297_v30 }
 0x258   : > { %v987_v47 = vrot.slane %v979_v42, %v4309_v41  ;;  %v994_v48 = vrot.slane %v980_v43, %v4309_v41 }
 0x259   : > { %v4299_v31 = vpop.permute.xlu0 %957  ;;  %v1100_v49 = vpop.permute.xlu1 %1099 }
 0x25a   : > { %1105 = vrot.lane.b32.xlu0 %v4297_v30, %s4059_s23  ;;  %1103 = vrot.lane.b32.xlu1 %v4299_v31, %s4059_s23  ;;  %v963_v39 = vcombine.low %v4281_v24, %v4299_v31  ;;  %v964_v40 = vcombine.high %v4281_v24, %v4299_v31 }
 0x25c   : > { %v971_v45 = vrot.slane %v963_v39, %v4309_v41  ;;  %v978_v46 = vrot.slane %v964_v40, %v4309_v41 }
 0x25e   : > { %v995_v52 = vcombine.low %v971_v45, %v987_v47  ;;  %v996_v53 = vcombine.high %v971_v45, %v987_v47  ;;  %v1011_v54 = vcombine.low %v978_v46, %v994_v48  ;;  %v1012_v55 = vcombine.high %v978_v46, %v994_v48 }
 0x260   : > { %v1003_v62 = vrot.slane %v995_v52, %v4319_v51  ;;  %v1010_v63 = vrot.slane %v996_v53, %v4319_v51  ;;  %v1019_v0 = vrot.slane %v1011_v54, %v4319_v51  ;;  %v1026_v1 = vrot.slane %v1012_v55, %v4319_v51 }
 0x262   : > { %v1031_v10 = vcombine.low %v1003_v62, %v1010_v63  ;;  %v3641_v11 = vcombine.high %v1003_v62, %v1010_v63  ;;  %v1047_v12 = vcombine.low %v1019_v0, %v1026_v1  ;;  %v3642_v13 = vcombine.high %v1019_v0, %v1026_v1 }
 0x264   : > { %v1038_v23 = vrot.slane %v1031_v10, %v4309_v41  ;;  %v1046_v25 = vrot.slane %v3641_v11, %v4309_v41  ;;  %v1054_v26 = vrot.slane %v1047_v12, %v4309_v41  ;;  %v1062_v28 = vrot.slane %v3642_v13, %v4309_v41  ;;  %v4372_v12 = vld [vmem:[%s4761_s4] sm:$0xff] }
 0x266   : > { %v1063_v40 = vcombine.low %v1038_v23, %v1046_v25  ;;  %v1079_v42 = vcombine.low %v1054_v26, %v1062_v28  ;;  %v1064_v43 = vcombine.high %v1038_v23, %v1046_v25  ;;  %v1080_v44 = vcombine.high %v1054_v26, %v1062_v28 }
 0x268   : > { %v1071_v52 = vrot.slane %v1063_v40, %v4319_v51  ;;  %v1087_v53 = vrot.slane %v1079_v42, %v4319_v51 }
 0x2c8   : > { %v1102_v50 = vpop.permute.xlu0 %1101 }
 0x2cc   : > { %v1104_v56 = vpop.permute.xlu1 %1103  ;;  %v1106_v57 = vpop.permute.xlu0 %1105 }
 0x2cd   : > { %v1111_v58 = vcombine.low %v1100_v49, %v1104_v56  ;;  %v1112_v59 = vcombine.high %v1100_v49, %v1104_v56  ;;  %v1127_v60 = vcombine.low %v1102_v50, %v1106_v57  ;;  %v1128_v61 = vcombine.high %v1102_v50, %v1106_v57 }
 0x2ce   : > { %v1078_v56 = vrot.slane %v1064_v43, %v4319_v51  ;;  %v1094_v57 = vrot.slane %v1080_v44, %v4319_v51 }
 0x2cf   : > { %v1119_v2 = vrot.slane %v1111_v58, %v4309_v41  ;;  %v1126_v3 = vrot.slane %v1112_v59, %v4309_v41  ;;  %v1135_v4 = vrot.slane %v1127_v60, %v4309_v41  ;;  %v1142_v5 = vrot.slane %v1128_v61, %v4309_v41 }
 0x2d0   : > { %v1095_v61 = vcombine.low %v1071_v52, %v1087_v53  ;;  %v1097_v62 = vcombine.low %v1078_v56, %v1094_v57 }
 0x2d1   : > { %v1143_v6 = vcombine.low %v1119_v2, %v1135_v4  ;;  %v1144_v7 = vcombine.high %v1119_v2, %v1135_v4  ;;  %v1159_v8 = vcombine.low %v1126_v3, %v1142_v5  ;;  %v1160_v9 = vcombine.high %v1126_v3, %v1142_v5 }
 0x2d2   : > { %v1395_v0 = vpack.c.bf16 %v1095_v61, %v1095_v61  ;;  %v1397_v1 = vpack.c.bf16 %v1097_v62, %v1097_v62  ;;  %v1096_v4 = vcombine.high %v1071_v52, %v1087_v53 }
 0x2d3   : > { %v1151_v14 = vrot.slane %v1143_v6, %v4319_v51  ;;  %v1158_v15 = vrot.slane %v1144_v7, %v4319_v51  ;;  %v1167_v16 = vrot.slane %v1159_v8, %v4319_v51  ;;  %v1174_v18 = vrot.slane %v1160_v9, %v4319_v51 }
 0x2d4   : > { %v1396_v6 = vpack.c.bf16 %v1096_v4, %v1096_v4  ;;  %v1098_v8 = vcombine.high %v1078_v56, %v1094_v57 }
 0x2d5   : > { %v1179_v19 = vcombine.low %v1151_v14, %v1158_v15  ;;  %v3643_v20 = vcombine.high %v1151_v14, %v1158_v15  ;;  %v1195_v21 = vcombine.low %v1167_v16, %v1174_v18  ;;  %v3644_v22 = vcombine.high %v1167_v16, %v1174_v18 }
 0x2d6   : > { %v1398_v9 = vpack.c.bf16 %v1098_v8, %v1098_v8 }
 0x2d7   : > { %v1186_v32 = vrot.slane %v1179_v19, %v4309_v41  ;;  %v1194_v33 = vrot.slane %v3643_v20, %v4309_v41  ;;  %v1202_v34 = vrot.slane %v1195_v21, %v4309_v41  ;;  %v1210_v35 = vrot.slane %v3644_v22, %v4309_v41 }
 0x2d9   : > { %v1211_v36 = vcombine.low %v1186_v32, %v1194_v33  ;;  %v1227_v37 = vcombine.low %v1202_v34, %v1210_v35  ;;  %v1212_v38 = vcombine.high %v1186_v32, %v1194_v33  ;;  %v1228_v39 = vcombine.high %v1202_v34, %v1210_v35 }
 0x2db   : > { %v1219_v45 = vrot.slane %v1211_v36, %v4319_v51  ;;  %v1235_v46 = vrot.slane %v1227_v37, %v4319_v51  ;;  %v1226_v47 = vrot.slane %v1212_v38, %v4319_v51  ;;  %v1242_v48 = vrot.slane %v1228_v39, %v4319_v51 }
 0x2dd   : > { %v1243_v49 = vcombine.low %v1219_v45, %v1235_v46  ;;  %v1245_v50 = vcombine.low %v1226_v47, %v1242_v48  ;;  %v1244_v60 = vcombine.high %v1219_v45, %v1235_v46  ;;  %v1246_v3 = vcombine.high %v1226_v47, %v1242_v48 }
 0x2df   : > { %v1399_v54 = vpack.c.bf16 %v1243_v49, %v1243_v49  ;;  %v1401_v55 = vpack.c.bf16 %v1245_v50, %v1245_v50  ;;  %v1400_v63 = vpack.c.bf16 %v1244_v60, %v1244_v60  ;;  %v1402_v5 = vpack.c.bf16 %v1246_v3, %v1246_v3 }
 0x2e1   : > { %v1408_v58 = vsel %vm1403_vm6, %v1399_v54, 0  ;;  %v1500_v59 = vsel %vm1403_vm6, %v1401_v55, 0  ;;  %v1454_v2 = vsel %vm1403_vm6, %v1400_v63, 0  ;;  %v1546_v7 = vsel %vm1403_vm6, %v1402_v5, 0 }
 0x2e2   : > { %3777 = vmatpush3.bf16.xpose.msra.mxu0 %v1408_v58  ;;  %3789 = vmatpush3.bf16.xpose.msra.mxu1 %v1500_v59 }
 0x2e3   : > { %3782 = vmatprep.subr.bf16.mxu0 %v4055_v17  ;;  %3800 = vmatprep.subr.bf16.mxu1 %v4055_v17 }
 0x2e9   : > { %3779 = vmatmul.mubr.msk.bf16.vlgmr.msra.gmra.mrb[4].mxu0 %vm1403_vm6, %v1395_v0  ;;  %3791 = vmatmul.mubr.msk.bf16.vlgmr.msra.gmra.mrb[0].mxu1 %vm1403_vm6, %v1397_v1 }
 0x2ea   : > { %3783 = vmatpush3.bf16.xpose.msra.mxu0 %v1454_v2  ;;  %3784 = vmatprep.mubr.msk.bf16.mxu0 %vm4056_vm4, %v4055_v17 }
 0x2eb   : > { %3794 = vmatprep.subr.bf16.mxu0 %v4055_v17  ;;  %3802 = vmatprep.mubr.msk.bf16.mxu1 %vm4056_vm4, %v4055_v17 }
 0x2f1   : > { %3785 = vmatmul.mubr.msk.bf16.vlgmr.msra.gmra.mrb[8].mxu0 %vm1403_vm6, %v1396_v6 }
 0x2f2   : > { %3795 = vmatpush3.bf16.xpose.msra.mxu0 %v1546_v7  ;;  %3796 = vmatprep.mubr.msk.bf16.mxu0 %vm4056_vm4, %v4055_v17 }
 0x2f3   : > { %3806 = vmatprep.subr.bf16.mxu0 %v4055_v17 }
 0x2f9   : > { %3797 = vmatmul.mubr.msk.bf16.vlgmr.msra.gmra.mrb[12].mxu0 %vm1403_vm6, %v1398_v9 }
 0x2fa   : > { %3808 = vmatprep.mubr.msk.bf16.mxu0 %vm4056_vm4, %v4055_v17 }
 0x3bc   : > { %v1444_v10 = vpop.f32.mrb[4].mxu0  ;;  %v1536_v11 = vpop.f32.mrb[0].mxu1 }
 0x3bd   : > { %v1588_v13 = vmul.f32 0.35355338, %v1444_v10  ;;  %v3780_v14 = vpop.f32.mrb[5].mxu0  ;;  %v3792_v15 = vpop.f32.mrb[1].mxu1  ;;  %v1590_v25 = vmul.f32 0.35355338, %v1536_v11 }
 0x3be   : > { %v1447_v16 = vpop.f32.mrb[6].mxu0  ;;  %v1539_v18 = vpop.f32.mrb[2].mxu1 }
 0x3bf   : > { %v3781_v19 = vpop.f32.mrb[7].mxu0  ;;  %v3793_v20 = vpop.f32.mrb[3].mxu1  ;;  %v1592_v21 = vadd.f32 %v1588_v13, %v4372_v12  ;;  %v1594_v36 = vadd.f32 %v1590_v25, %v4372_v12 }
 0x3c1   : > { %v1596_v22 = vsel %vm1403_vm6, %v1592_v21, -inf  ;;  %v1602_v39 = vsel %vm1403_vm6, %v1594_v36, -inf }
 0x3c2   : > { %1597 = vmax.xlane.f32.xlu1 %v1596_v22 }
 0x3c4   : > { %v1490_v23 = vpop.f32.mrb[8].mxu0 }
 0x3c5   : > { %v1589_v26 = vmul.f32 0.35355338, %v1490_v23  ;;  %v3786_v28 = vpop.f32.mrb[9].mxu0 }
 0x3c6   : > { %v1493_v32 = vpop.f32.mrb[10].mxu0 }
 0x3c7   : > { %v3787_v33 = vpop.f32.mrb[11].mxu0  ;;  %v1593_v34 = vadd.f32 %v1589_v26, %v4372_v12 }
 0x3c9   : > { %v1599_v35 = vsel %vm1403_vm6, %v1593_v34, -inf }
 0x3ca   : > { %1600 = vmax.xlane.f32.xlu0 %v1599_v35 }
 0x3cc   : > { %v1582_v37 = vpop.f32.mrb[12].mxu0 }
 0x3cd   : > { %v3798_v38 = vpop.f32.mrb[13].mxu0  ;;  %v1591_v43 = vmul.f32 0.35355338, %v1582_v37 }
 0x3ce   : > { %1603 = vmax.xlane.f32.xlu0 %v1602_v39  ;;  %v1585_v40 = vpop.f32.mrb[14].mxu0 }
 0x3cf   : > { %v3799_v42 = vpop.f32.mrb[15].mxu0  ;;  %v1595_v44 = vadd.f32 %v1591_v43, %v4372_v12 }
 0x3d1   : > { %v1605_v45 = vsel %vm1403_vm6, %v1595_v44, -inf }
 0x3d3   : > { %1990 = vrot.lane.b32.xlu1 %v4283_v27, %s4060_s22 }
 0x3d7   : > { %1993 = vrot.lane.b32.xlu1 %v4283_v27, %s4057_s24 }
 0x3db   : > { %1249 = vrot.lane.b32.xlu1 %v4293_v29, %s4063_s28 }
 0x3e4   : > { %1987 = vrot.lane.b32.xlu0 %v4283_v27, %s4058_s19 }
 0x3e8   : > { %1247 = vrot.lane.b32.xlu0 %v4281_v24, %s4063_s28 }
 0x3ec   : > { %1251 = vrot.lane.b32.xlu0 %v4299_v31, %s4063_s28 }
 0x3f0   : > { %2132 = vrot.lane.b32.xlu0 %v4283_v27, %s4059_s23 }
 0x3ff   : > { %1606 = vmax.xlane.f32.xlu1 %v1605_v45 }
 0x410   : > { %1253 = vrot.lane.b32.xlu1 %v4297_v30, %s4063_s28 }
 0x44f   : > { %v1598_v29 = vpop.xlane.xlu1 %1597 }
 0x450   : > { %v1608_v46 = vsub.f32 %v1592_v21, %v1598_v29 }
 0x452   : > { %v1612_v47 = vmul.f32 1.442695, %v1608_v46 }
 0x453   : > { %v4410_v57 = vpop.permute.xlu1 %1990 }
 0x454   : > { %3985 = vpow2.f32 %v1612_v47 }
 0x457   : > { %v1601_v24 = vpop.xlane.xlu0 %1600  ;;  %v4414_v59 = vpop.permute.xlu1 %1993 }
 0x458   : > { %v1609_v55 = vsub.f32 %v1593_v34, %v1601_v24 }
 0x45a   : > { %v1614_v56 = vmul.f32 1.442695, %v1609_v55 }
 0x45b   : > { %v1604_v48 = vpop.xlane.xlu0 %1603  ;;  %v1250_v62 = vpop.permute.xlu1 %1249 }
 0x45c   : > { %v1610_v49 = vsub.f32 %v1594_v36, %v1604_v48 }
 0x45e   : > { %v4398_v31 = vpop.eup %3985  ;;  %v1616_v50 = vmul.f32 1.442695, %v1610_v49 }
 0x45f   : > { %v4400_v52 = vpop.permute.xlu0 %1987  ;;  %v1620_v53 = vsel %vm1403_vm6, %v4398_v31, 0.0 }
 0x460   : > { %3987 = vpow2.f32 %v1616_v50  ;;  %1621 = vadd.xlane.f32.xlu0 %v1620_v53  ;;  %2134 = vrot.lane.b32.xlu1 %v4400_v52, %s4059_s23 }
 0x461   : > { %3989 = vpow2.f32 %v1614_v56 }
 0x463   : > { %v1248_v61 = vpop.permute.xlu0 %1247 }
 0x467   : > { %v1252_v63 = vpop.permute.xlu0 %1251 }
 0x468   : > { %v1259_v2 = vcombine.low %v1248_v61, %v1252_v63  ;;  %v1260_v3 = vcombine.high %v1248_v61, %v1252_v63 }
 0x46a   : > { %v4406_v30 = vpop.eup %3987  ;;  %v1267_v8 = vrot.slane %v1259_v2, %v4309_v41  ;;  %v1274_v9 = vrot.slane %v1260_v3, %v4309_v41 }
 0x46b   : > { %v1626_v54 = vsel %vm1403_vm6, %v4406_v30, 0.0  ;;  %v4412_v58 = vpop.eup %3989 }
 0x46c   : > { %1627 = vadd.xlane.f32.xlu0 %v1626_v54  ;;  %v1623_v60 = vsel %vm1403_vm6, %v4412_v58, 0.0  ;;  %v2133_v54 = vpop.permute.xlu0 %2132 }
 0x482   : > { %2136 = vrot.lane.b32.xlu0 %v4410_v57, %s4059_s23 }
 0x484   : > { %1624 = vadd.xlane.f32.xlu1 %v1623_v60 }
 0x48c   : > { %v1607_v0 = vpop.xlane.xlu1 %1606 }
 0x48d   : > { %v1611_v1 = vsub.f32 %v1595_v44, %v1607_v0 }
 0x48f   : > { %v1618_v4 = vmul.f32 1.442695, %v1611_v1 }
 0x490   : > { %v1254_v5 = vpop.permute.xlu1 %1253 }
 0x491   : > { %3991 = vpow2.f32 %v1618_v4  ;;  %v1275_v6 = vcombine.low %v1250_v62, %v1254_v5  ;;  %v1276_v7 = vcombine.high %v1250_v62, %v1254_v5 }
 0x493   : > { %v1283_v10 = vrot.slane %v1275_v6, %v4309_v41  ;;  %v1290_v11 = vrot.slane %v1276_v7, %v4309_v41 }
 0x495   : > { %v1291_v13 = vcombine.low %v1267_v8, %v1283_v10  ;;  %v1292_v14 = vcombine.high %v1267_v8, %v1283_v10  ;;  %v1307_v15 = vcombine.low %v1274_v9, %v1290_v11  ;;  %v1308_v16 = vcombine.high %v1274_v9, %v1290_v11 }
 0x496   : > { %v1996_v10 = vcombine.low %v4283_v27, %v4410_v57  ;;  %v1997_v11 = vcombine.high %v4283_v27, %v4410_v57 }
 0x497   : > { %v1299_v18 = vrot.slane %v1291_v13, %v4319_v51  ;;  %v1306_v19 = vrot.slane %v1292_v14, %v4319_v51  ;;  %v1315_v20 = vrot.slane %v1307_v15, %v4319_v51  ;;  %v1322_v21 = vrot.slane %v1308_v16, %v4319_v51 }
 0x498   : > { %v2004_v14 = vrot.slane %v1996_v10, %v4309_v41  ;;  %v2011_v16 = vrot.slane %v1997_v11, %v4309_v41 }
 0x499   : > { %v1327_v22 = vcombine.low %v1299_v18, %v1306_v19  ;;  %v3645_v23 = vcombine.high %v1299_v18, %v1306_v19  ;;  %v1343_v25 = vcombine.low %v1315_v20, %v1322_v21  ;;  %v3646_v26 = vcombine.high %v1315_v20, %v1322_v21 }
 0x49b   : > { %v4428_v28 = vpop.eup %3991  ;;  %v1334_v32 = vrot.slane %v1327_v22, %v4309_v41  ;;  %v1342_v33 = vrot.slane %v3645_v23, %v4309_v41  ;;  %v1350_v34 = vrot.slane %v1343_v25, %v4309_v41  ;;  %v1358_v35 = vrot.slane %v3646_v26, %v4309_v41 }
 0x49c   : > { %v1629_v36 = vsel %vm1403_vm6, %v4428_v28, 0.0 }
 0x49d   : > { %1630 = vadd.xlane.f32.xlu1 %v1629_v36  ;;  %v1359_v37 = vcombine.low %v1334_v32, %v1342_v33  ;;  %v1375_v38 = vcombine.low %v1350_v34, %v1358_v35  ;;  %v1360_v39 = vcombine.high %v1334_v32, %v1342_v33  ;;  %v1376_v40 = vcombine.high %v1350_v34, %v1358_v35 }
 0x49f   : > { %v1367_v42 = vrot.slane %v1359_v37, %v4319_v51  ;;  %v1383_v43 = vrot.slane %v1375_v38, %v4319_v51  ;;  %v1374_v44 = vrot.slane %v1360_v39, %v4319_v51  ;;  %v1390_v45 = vrot.slane %v1376_v40, %v4319_v51 }
 0x4a1   : > { %v1391_v29 = vcombine.low %v1367_v42, %v1383_v43  ;;  %v1392_v46 = vcombine.high %v1367_v42, %v1383_v43  ;;  %v1393_v47 = vcombine.low %v1374_v44, %v1390_v45  ;;  %v1394_v24 = vcombine.high %v1374_v44, %v1390_v45 }
 0x4a3   : > { %v1644_v48 = vpack.c.bf16 %v1391_v29, %v1391_v29  ;;  %v1645_v49 = vpack.c.bf16 %v1392_v46, %v1392_v46  ;;  %v1646_v62 = vpack.c.bf16 %v1393_v47, %v1393_v47  ;;  %v1647_v7 = vpack.c.bf16 %v1394_v24, %v1394_v24 }
 0x4a5   : > { %v1653_v50 = vsel %vm1651_vm7, %v1644_v48, 0  ;;  %v1699_v53 = vsel %vm1651_vm7, %v1645_v49, 0  ;;  %v1745_v0 = vsel %vm1651_vm7, %v1646_v62, 0  ;;  %v1791_v9 = vsel %vm1651_vm7, %v1647_v7, 0 }
 0x4a6   : > { %3801 = vmatpush3.bf16.msra.mxu1 %v1653_v50  ;;  %3807 = vmatpush3.bf16.msra.mxu0 %v1699_v53 }
 0x4a7   : > { %3812 = vmatprep.subr.bf16.mxu1 %v4055_v17  ;;  %3818 = vmatprep.subr.bf16.mxu0 %v4055_v17 }
 0x4ae   : > { %2138 = vrot.lane.b32.xlu1 %v4414_v59, %s4059_s23  ;;  %s4804_s23 = scalar_lea.vmem %s4765_s8, %s4191_s1 }
 0x4ed   : > { %v1622_v55 = vpop.xlane.xlu0 %1621 }
 0x4ee   : > { %3993 = vrcp.f32 %v1622_v55 }
 0x4f8   : > { %v3994_v56 = vpop.eup %3993 }
 0x4f9   : > { %v1636_v60 = vmul.f32 %v3994_v56, %v4398_v31  ;;  %v1628_v61 = vpop.xlane.xlu0 %1627  ;;  %v2135_v31 = vpop.permute.xlu1 %2134 }
 0x4fa   : > { %3995 = vrcp.f32 %v1628_v61 }
 0x4fb   : > { %v1640_v63 = vpack.c.bf16 %v1636_v60, %v1636_v60 }
 0x4fd   : > { %3803 = vmatmul.mubr.msk.bf16.vlgmr.msra.gmra.mrb[4].mxu1 %vm1403_vm6, %v1640_v63  ;;  %v2137_v20 = vpop.permute.xlu0 %2136 }
 0x4fe   : > { %3813 = vmatpush3.bf16.msra.mxu1 %v1745_v0  ;;  %3814 = vmatprep.mubr.msk.bf16.mxu1 %vm4056_vm4, %v4055_v17  ;;  %v2144_v25 = vcombine.low %v2133_v54, %v2137_v20  ;;  %v2145_v26 = vcombine.high %v2133_v54, %v2137_v20 }
 0x4ff   : > { %3824 = vmatprep.subr.bf16.mxu1 %v4055_v17 }
 0x500   : > { %v2152_v39 = vrot.slane %v2144_v25, %v4309_v41  ;;  %v2159_v40 = vrot.slane %v2145_v26, %v4309_v41 }
 0x504   : > { %v3996_v1 = vpop.eup %3995 }
 0x505   : > { %v1638_v2 = vmul.f32 %v3996_v1, %v4406_v30  ;;  %v2012_v30 = vcombine.low %v4400_v52, %v4414_v59 }
 0x507   : > { %v1642_v3 = vpack.c.bf16 %v1638_v2, %v1638_v2  ;;  %v2020_v13 = vrot.slane %v2012_v30, %v4309_v41 }
 0x509   : > { %3815 = vmatmul.mubr.msk.bf16.vlgmr.msra.gmra.mrb[8].mxu1 %vm1403_vm6, %v1642_v3  ;;  %v2028_v18 = vcombine.low %v2004_v14, %v2020_v13  ;;  %v2029_v19 = vcombine.high %v2004_v14, %v2020_v13 }
 0x50a   : > { %3826 = vmatprep.mubr.msk.bf16.mxu1 %vm4056_vm4, %v4055_v17 }
 0x50b   : > { %v2036_v32 = vrot.slane %v2028_v18, %v4319_v51  ;;  %v2043_v33 = vrot.slane %v2029_v19, %v4319_v51 }
 0x50d   : > { %v2064_v44 = vcombine.low %v2036_v32, %v2043_v33  ;;  %v3657_v24 = vcombine.high %v2036_v32, %v2043_v33 }
 0x50f   : > { %v2071_v60 = vrot.slane %v2064_v44, %v4309_v41  ;;  %v2079_v2 = vrot.slane %v3657_v24, %v4309_v41 }
 0x511   : > { %v1625_v4 = vpop.xlane.xlu1 %1624  ;;  %v2096_v13 = vcombine.low %v2071_v60, %v2079_v2 }
 0x512   : > { %3997 = vrcp.f32 %v1625_v4 }
 0x51c   : > { %v3998_v5 = vpop.eup %3997 }
 0x51d   : > { %v1637_v6 = vmul.f32 %v3998_v5, %v4412_v58  ;;  %v2013_v58 = vcombine.high %v4400_v52, %v4414_v59 }
 0x51f   : > { %v1641_v8 = vpack.c.bf16 %v1637_v6, %v1637_v6  ;;  %v2027_v15 = vrot.slane %v2013_v58, %v4309_v41 }
 0x521   : > { %3809 = vmatmul.mubr.msk.bf16.vlgmr.msra.gmra.mrb[16].mxu0 %vm1403_vm6, %v1641_v8  ;;  %v2044_v22 = vcombine.low %v2011_v16, %v2027_v15  ;;  %v2045_v23 = vcombine.high %v2011_v16, %v2027_v15 }
 0x522   : > { %3819 = vmatpush3.bf16.msra.mxu0 %v1791_v9  ;;  %3820 = vmatprep.mubr.msk.bf16.mxu0 %vm4056_vm4, %v4055_v17 }
 0x523   : > { %3830 = vmatprep.subr.bf16.mxu0 %v4055_v17  ;;  %v2052_v37 = vrot.slane %v2044_v22, %v4319_v51  ;;  %v2059_v38 = vrot.slane %v2045_v23, %v4319_v51  ;;  %v2104_v22 = vrot.slane %v2096_v13, %v4319_v51 }
 0x525   : > { %v2080_v48 = vcombine.low %v2052_v37, %v2059_v38  ;;  %v3658_v49 = vcombine.high %v2052_v37, %v2059_v38 }
 0x527   : > { %v2087_v3 = vrot.slane %v2080_v48, %v4309_v41 }
 0x52a   : > { %v1631_v21 = vpop.xlane.xlu1 %1630 }
 0x52b   : > { %3999 = vrcp.f32 %v1631_v21 }
 0x52e   : > { %v2139_v34 = vpop.permute.xlu1 %2138 }
 0x52f   : > { %v2160_v35 = vcombine.low %v2135_v31, %v2139_v34  ;;  %v2161_v36 = vcombine.high %v2135_v31, %v2139_v34  ;;  %v2095_v31 = vrot.slane %v3658_v49, %v4309_v41  ;;  %v2097_v34 = vcombine.high %v2071_v60, %v2079_v2 }
 0x531   : > { %v2168_v42 = vrot.slane %v2160_v35, %v4309_v41  ;;  %v2175_v43 = vrot.slane %v2161_v36, %v4309_v41  ;;  %v2112_v14 = vcombine.low %v2087_v3, %v2095_v31  ;;  %v2113_v37 = vcombine.high %v2087_v3, %v2095_v31 }
 0x533   : > { %v2176_v45 = vcombine.low %v2152_v39, %v2168_v42  ;;  %v2177_v29 = vcombine.high %v2152_v39, %v2168_v42  ;;  %v2192_v46 = vcombine.low %v2159_v40, %v2175_v43  ;;  %v2193_v47 = vcombine.high %v2159_v40, %v2175_v43 }
 0x534   : > { %v2120_v23 = vrot.slane %v2112_v14, %v4319_v51  ;;  %v2111_v43 = vrot.slane %v2097_v34, %v4319_v51  ;;  %v2127_v44 = vrot.slane %v2113_v37, %v4319_v51 }
 0x535   : > { %v4000_v50 = vpop.eup %3999  ;;  %v2184_v53 = vrot.slane %v2176_v45, %v4319_v51  ;;  %v2191_v54 = vrot.slane %v2177_v29, %v4319_v51  ;;  %v2200_v55 = vrot.slane %v2192_v46, %v4319_v51  ;;  %v2207_v56 = vrot.slane %v2193_v47, %v4319_v51 }
 0x536   : > { %v1639_v61 = vmul.f32 %v4000_v50, %v4428_v28  ;;  %v2128_v35 = vcombine.low %v2104_v22, %v2120_v23  ;;  %v2129_v36 = vcombine.high %v2104_v22, %v2120_v23  ;;  %v2130_v46 = vcombine.low %v2111_v43, %v2127_v44 }
 0x537   : > { %v2212_v62 = vcombine.low %v2184_v53, %v2191_v54  ;;  %v3659_v63 = vcombine.high %v2184_v53, %v2191_v54  ;;  %v2228_v0 = vcombine.low %v2200_v55, %v2207_v56  ;;  %v3660_v1 = vcombine.high %v2200_v55, %v2207_v56 }
 0x538   : > { %v1643_v4 = vpack.c.bf16 %v1639_v61, %v1639_v61  ;;  %v2428_v40 = vpack.c.bf16 %v2128_v35, %v2128_v35  ;;  %v2429_v42 = vpack.c.bf16 %v2129_v36, %v2129_v36  ;;  %v2131_v47 = vcombine.high %v2111_v43, %v2127_v44 }
 0x539   : > { %v2219_v5 = vrot.slane %v2212_v62, %v4309_v41  ;;  %v2227_v6 = vrot.slane %v3659_v63, %v4309_v41  ;;  %v2235_v7 = vrot.slane %v2228_v0, %v4309_v41  ;;  %v2243_v8 = vrot.slane %v3660_v1, %v4309_v41 }
 0x53a   : > { %3821 = vmatmul.mubr.msk.bf16.vlgmr.msra.gmra.mrb[20].mxu0 %vm1403_vm6, %v1643_v4  ;;  %v2430_v24 = vpack.c.bf16 %v2130_v46, %v2130_v46  ;;  %v2431_v48 = vpack.c.bf16 %v2131_v47, %v2131_v47 }
 0x53b   : > { %v2244_v28 = vcombine.low %v2219_v5, %v2227_v6  ;;  %v2260_v9 = vcombine.low %v2235_v7, %v2243_v8  ;;  %3832 = vmatprep.mubr.msk.bf16.mxu0 %vm4056_vm4, %v4055_v17  ;;  %v2245_v30 = vcombine.high %v2219_v5, %v2227_v6  ;;  %v2261_v10 = vcombine.high %v2235_v7, %v2243_v8 }
 0x53d   : > { %v2252_v58 = vrot.slane %v2244_v28, %v4319_v51  ;;  %v2268_v11 = vrot.slane %v2260_v9, %v4319_v51  ;;  %v2259_v18 = vrot.slane %v2245_v30, %v4319_v51  ;;  %v2275_v19 = vrot.slane %v2261_v10, %v4319_v51 }
 0x53f   : > { %v2276_v15 = vcombine.low %v2252_v58, %v2268_v11  ;;  %v2277_v16 = vcombine.high %v2252_v58, %v2268_v11  ;;  %v2278_v32 = vcombine.low %v2259_v18, %v2275_v19  ;;  %v2279_v33 = vcombine.high %v2259_v18, %v2275_v19 }
 0x541   : > { %v2432_v20 = vpack.c.bf16 %v2276_v15, %v2276_v15  ;;  %v2433_v21 = vpack.c.bf16 %v2277_v16, %v2277_v16  ;;  %v2434_v38 = vpack.c.bf16 %v2278_v32, %v2278_v32  ;;  %v2435_v39 = vpack.c.bf16 %v2279_v33, %v2279_v33 }
 0x543   : > { %v2440_v25 = vsel %vm1403_vm6, %v2432_v20, 0  ;;  %v2486_v26 = vsel %vm1403_vm6, %v2433_v21, 0  ;;  %v2532_v45 = vsel %vm1403_vm6, %v2434_v38, 0  ;;  %v2578_v29 = vsel %vm1403_vm6, %v2435_v39, 0 }
 0x544   : > { %3825 = vmatpush3.bf16.xpose.msra.mxu1 %v2440_v25  ;;  %3831 = vmatpush3.bf16.xpose.msra.mxu0 %v2486_v26 }
 0x545   : > { %3836 = vmatprep.subr.bf16.mxu1 %v4055_v17  ;;  %3842 = vmatprep.subr.bf16.mxu0 %v4055_v17 }
 0x54b   : > { %3827 = vmatmul.mubr.msk.bf16.vlgmr.msra.gmra.mrb[12].mxu1 %vm1403_vm6, %v2428_v40  ;;  %3833 = vmatmul.mubr.msk.bf16.vlgmr.msra.gmra.mrb[24].mxu0 %vm1403_vm6, %v2429_v42 }
 0x54c   : > { %3837 = vmatpush3.bf16.xpose.msra.mxu1 %v2532_v45  ;;  %3843 = vmatpush3.bf16.xpose.msra.mxu0 %v2578_v29 }
 0x54d   : > { %3838 = vmatprep.mubr.msk.bf16.mxu1 %vm4056_vm4, %v4055_v17  ;;  %3844 = vmatprep.mubr.msk.bf16.mxu0 %vm4056_vm4, %v4055_v17 }
 0x54e   : > { %3848 = vmatprep.subr.bf16.mxu1 %v4055_v17  ;;  %3854 = vmatprep.subr.bf16.mxu0 %v4055_v17 }
 0x553   : > { %3839 = vmatmul.mubr.msk.bf16.vlgmr.msra.gmra.mrb[16].mxu1 %vm1403_vm6, %v2430_v24  ;;  %3845 = vmatmul.mubr.msk.bf16.vlgmr.msra.gmra.mrb[28].mxu0 %vm1403_vm6, %v2431_v48 }
 0x554   : > { %3850 = vmatprep.mubr.msk.bf16.mxu1 %vm4056_vm4, %v4055_v17  ;;  %3856 = vmatprep.mubr.msk.bf16.mxu0 %vm4056_vm4, %v4055_v17 }
 0x5d0   : > { %v1689_v49 = vpop.f32.mrb[4].mxu1 }
 0x5d1   : > { %v3804_v50 = vpop.f32.mrb[5].mxu1 }
 0x5d2   : > { %v1692_v53 = vpop.f32.mrb[6].mxu1 }
 0x5d3   : > { %v3805_v54 = vpop.f32.mrb[7].mxu1 }
 0x5dc   : > { %v1781_v55 = vpop.f32.mrb[8].mxu1 }
 0x5dd   : > { %v1833_v56 = vcombine.low %v1689_v49, %v1781_v55  ;;  %v1834_v60 = vcombine.high %v1689_v49, %v1781_v55  ;;  %v3816_v61 = vpop.f32.mrb[9].mxu1 }
 0x5de   : > { %v1784_v62 = vpop.f32.mrb[10].mxu1 }
 0x5df   : > { %v3817_v63 = vpop.f32.mrb[11].mxu1  ;;  %v1841_v8 = vrot.slane %v1833_v56, %v4309_v41  ;;  %v1848_v28 = vrot.slane %v1834_v60, %v4309_v41 }
 0x5f4   : > { %v1735_v0 = vpop.f32.mrb[16].mxu0 }
 0x5f5   : > { %v3810_v1 = vpop.f32.mrb[17].mxu0 }
 0x5f6   : > { %v1738_v2 = vpop.f32.mrb[18].mxu0 }
 0x5f7   : > { %v3811_v3 = vpop.f32.mrb[19].mxu0 }
 0x60d   : > { %v1827_v31 = vpop.f32.mrb[20].mxu0 }
 0x60e   : > { %v1849_v4 = vcombine.low %v1735_v0, %v1827_v31  ;;  %v1850_v5 = vcombine.high %v1735_v0, %v1827_v31  ;;  %v3822_v6 = vpop.f32.mrb[21].mxu0 }
 0x60f   : > { %v1830_v7 = vpop.f32.mrb[22].mxu0 }
 0x610   : > { %v1857_v9 = vrot.slane %v1849_v4, %v4309_v41  ;;  %v1864_v30 = vrot.slane %v1850_v5, %v4309_v41  ;;  %v3823_v10 = vpop.f32.mrb[23].mxu0 }
 0x612   : > { %v1865_v58 = vcombine.low %v1841_v8, %v1857_v9  ;;  %v1866_v11 = vcombine.high %v1841_v8, %v1857_v9  ;;  %v1881_v13 = vcombine.low %v1848_v28, %v1864_v30  ;;  %v1882_v14 = vcombine.high %v1848_v28, %v1864_v30 }
 0x614   : > { %v1873_v15 = vrot.slane %v1865_v58, %v4319_v51  ;;  %v1880_v16 = vrot.slane %v1866_v11, %v4319_v51  ;;  %v1889_v18 = vrot.slane %v1881_v13, %v4319_v51  ;;  %v1896_v19 = vrot.slane %v1882_v14, %v4319_v51 }
 0x616   : > { %v1901_v20 = vcombine.low %v1873_v15, %v1880_v16  ;;  %v3655_v21 = vcombine.high %v1873_v15, %v1880_v16  ;;  %v1917_v22 = vcombine.low %v1889_v18, %v1896_v19  ;;  %v3656_v23 = vcombine.high %v1889_v18, %v1896_v19 }
 0x618   : > { %v1908_v25 = vrot.slane %v1901_v20, %v4309_v41  ;;  %v1916_v26 = vrot.slane %v3655_v21, %v4309_v41  ;;  %v1924_v32 = vrot.slane %v1917_v22, %v4309_v41  ;;  %v1932_v33 = vrot.slane %v3656_v23, %v4309_v41 }
 0x61a   : > { %v1934_v34 = vcombine.high %v1908_v25, %v1916_v26  ;;  %v1950_v35 = vcombine.high %v1924_v32, %v1932_v33  ;;  %v1933_v36 = vcombine.low %v1908_v25, %v1916_v26  ;;  %v1949_v37 = vcombine.low %v1924_v32, %v1932_v33 }
 0x61c   : > { %v4539_v38 = vrot.slane %v1934_v34, %v4319_v51  ;;  %v4542_v39 = vrot.slane %v1950_v35, %v4319_v51  ;;  %v4545_v40 = vrot.slane %v1933_v36, %v4319_v51  ;;  %v4548_v42 = vrot.slane %v1949_v37, %v4319_v51 }
 0x61e   : > { %v2476_v43 = vpop.f32.mrb[12].mxu1  ;;  %v2522_v44 = vpop.f32.mrb[24].mxu0  ;;  %v1967_v45 = vcombine.low %v4539_v38, %v4542_v39  ;;  %v1965_v29 = vcombine.low %v4545_v40, %v4548_v42  ;;  %v1966_v46 = vcombine.high %v4545_v40, %v4548_v42  ;;  %v1968_v47 = vcombine.high %v4539_v38, %v4542_v39  ;;  %v3673_v40 = vld [vmem:[%s4804_s23] ss:$0 sm:$0xff] }
 0x61f   : > { %v2620_v24 = vmul.f32 0.35355338, %v2476_v43  ;;  %v2621_v48 = vmul.f32 0.35355338, %v2522_v44  ;;  %v3828_v49 = vpop.f32.mrb[13].mxu1  ;;  %v3834_v50 = vpop.f32.mrb[25].mxu0 }
 0x620   : > { %v2479_v53 = vpop.f32.mrb[14].mxu1  ;;  %v2525_v54 = vpop.f32.mrb[26].mxu0 }
 0x621   : > { %v3829_v55 = vpop.f32.mrb[15].mxu1  ;;  %v3835_v56 = vpop.f32.mrb[27].mxu0  ;;  %v2624_v60 = vadd.f32 %v2620_v24, %v4372_v12  ;;  %v2625_v61 = vadd.f32 %v2621_v48, %v4372_v12 }
 0x623   : > { %v2628_v62 = vsel %vm1403_vm6, %v2624_v60, -inf  ;;  %v2631_v63 = vsel %vm1403_vm6, %v2625_v61, -inf }
 0x624   : > { %2629 = vmax.xlane.f32.xlu0 %v2628_v62  ;;  %2632 = vmax.xlane.f32.xlu1 %v2631_v63 }
 0x626   : > { %v2568_v0 = vpop.f32.mrb[16].mxu1  ;;  %v2614_v1 = vpop.f32.mrb[28].mxu0 }
 0x627   : > { %v2622_v2 = vmul.f32 0.35355338, %v2568_v0  ;;  %v2623_v3 = vmul.f32 0.35355338, %v2614_v1  ;;  %v3840_v31 = vpop.f32.mrb[17].mxu1  ;;  %v3846_v4 = vpop.f32.mrb[29].mxu0 }
 0x628   : > { %v2571_v5 = vpop.f32.mrb[18].mxu1  ;;  %v2617_v6 = vpop.f32.mrb[30].mxu0 }
 0x629   : > { %v3841_v7 = vpop.f32.mrb[19].mxu1  ;;  %v3847_v8 = vpop.f32.mrb[31].mxu0  ;;  %v2626_v28 = vadd.f32 %v2622_v2, %v4372_v12  ;;  %v2627_v30 = vadd.f32 %v2623_v3, %v4372_v12 }
 0x62b   : > { %v2634_v9 = vsel %vm1403_vm6, %v2626_v28, -inf  ;;  %v2637_v10 = vsel %vm1403_vm6, %v2627_v30, -inf }
 0x62c   : > { %2635 = vmax.xlane.f32.xlu0 %v2634_v9 }
 0x630   : > { %2638 = vmax.xlane.f32.xlu0 %v2637_v10 }
 0x635   : > { %2280 = vrot.lane.b32.xlu1 %v4283_v27, %s4063_s28 }
 0x6b1   : > { %v2630_v58 = vpop.xlane.xlu0 %2629  ;;  %v2633_v11 = vpop.xlane.xlu1 %2632 }
 0x6b2   : > { %v2640_v13 = vsub.f32 %v2624_v60, %v2630_v58  ;;  %v2641_v14 = vsub.f32 %v2625_v61, %v2633_v11 }
 0x6b4   : > { %v2644_v15 = vmul.f32 1.442695, %v2640_v13  ;;  %v2646_v16 = vmul.f32 1.442695, %v2641_v14 }
 0x6b6   : > { %4001 = vpow2.f32 %v2644_v15 }
 0x6b7   : > { %4003 = vpow2.f32 %v2646_v16 }
 0x6b9   : > { %v2636_v27 = vpop.xlane.xlu0 %2635 }
 0x6ba   : > { %v2642_v21 = vsub.f32 %v2626_v28, %v2636_v27 }
 0x6bc   : > { %v2648_v25 = vmul.f32 1.442695, %v2642_v21 }
 0x6bd   : > { %v2639_v22 = vpop.xlane.xlu0 %2638 }
 0x6be   : > { %v2643_v23 = vsub.f32 %v2627_v30, %v2639_v22  ;;  %4005 = vpow2.f32 %v2648_v25 }
 0x6c0   : > { %v4568_v18 = vpop.eup %4001  ;;  %v2650_v26 = vmul.f32 1.442695, %v2643_v23 }
 0x6c1   : > { %v4570_v19 = vpop.eup %4003  ;;  %v2652_v12 = vsel %vm1403_vm6, %v4568_v18, 0.0 }
 0x6c2   : > { %2653 = vadd.xlane.f32.xlu1 %v2652_v12  ;;  %v2655_v20 = vsel %vm1403_vm6, %v4570_v19, 0.0  ;;  %4007 = vpow2.f32 %v2650_v26 }
 0x6c3   : > { %2656 = vadd.xlane.f32.xlu0 %v2655_v20 }
 0x6c8   : > { %v4582_v32 = vpop.eup %4005 }
 0x6cc   : > { %v4584_v33 = vpop.eup %4007 }
 0x6d3   : > { %2284 = vrot.lane.b32.xlu1 %v4410_v57, %s4063_s28  ;;  %v2658_v57 = vsel %vm1403_vm6, %v4582_v32, 0.0 }
 0x6d7   : > { %2286 = vrot.lane.b32.xlu1 %v4414_v59, %s4063_s28  ;;  %v2661_v59 = vsel %vm1403_vm6, %v4584_v33, 0.0 }
 0x6d9   : > { %2282 = vrot.lane.b32.xlu0 %v4400_v52, %s4063_s28  ;;  %v2281_v52 = vpop.permute.xlu1 %2280 }
 0x6f8   : > { %2659 = vadd.xlane.f32.xlu0 %v2658_v57 }
 0x6fb   : > { %2662 = vadd.xlane.f32.xlu1 %v2661_v59 }
 0x74f   : > { %v2654_v34 = vpop.xlane.xlu1 %2653 }
 0x750   : > { %v2657_v35 = vpop.xlane.xlu0 %2656  ;;  %4009 = vrcp.f32 %v2654_v34 }
 0x751   : > { %4011 = vrcp.f32 %v2657_v35 }
 0x753   : > { %v2285_v36 = vpop.permute.xlu1 %2284 }
 0x754   : > { %v2292_v37 = vcombine.low %v2281_v52, %v2285_v36  ;;  %v2293_v43 = vcombine.high %v2281_v52, %v2285_v36  ;;  %v2283_v44 = vpop.permute.xlu0 %2282 }
 0x756   : > { %v2300_v50 = vrot.slane %v2292_v37, %v4309_v41  ;;  %v2307_v53 = vrot.slane %v2293_v43, %v4309_v41 }
 0x757   : > { %v2287_v24 = vpop.permute.xlu1 %2286 }
 0x758   : > { %v2308_v48 = vcombine.low %v2283_v44, %v2287_v24  ;;  %v2309_v49 = vcombine.high %v2283_v44, %v2287_v24 }
 0x75a   : > { %v2316_v54 = vrot.slane %v2308_v48, %v4309_v41  ;;  %v2323_v55 = vrot.slane %v2309_v49, %v4309_v41  ;;  %v4010_v14 = vpop.eup %4009 }
 0x75b   : > { %v4012_v12 = vpop.eup %4011  ;;  %v2668_v23 = vmul.f32 %v4010_v14, %v4568_v18 }
 0x75c   : > { %v2324_v56 = vcombine.low %v2300_v50, %v2316_v54  ;;  %v2325_v60 = vcombine.high %v2300_v50, %v2316_v54  ;;  %v2340_v61 = vcombine.low %v2307_v53, %v2323_v55  ;;  %v2341_v62 = vcombine.high %v2307_v53, %v2323_v55 }
 0x75d   : > { %v2669_v25 = vmul.f32 %v4012_v12, %v4570_v19  ;;  %v2672_v36 = vpack.c.bf16 %v2668_v23, %v2668_v23 }
 0x75e   : > { %v2332_v63 = vrot.slane %v2324_v56, %v4319_v51  ;;  %v2339_v0 = vrot.slane %v2325_v60, %v4319_v51  ;;  %v2348_v1 = vrot.slane %v2340_v61, %v4319_v51  ;;  %v2355_v2 = vrot.slane %v2341_v62, %v4319_v51 }
 0x75f   : > { %v2673_v37 = vpack.c.bf16 %v2669_v25, %v2669_v25 }
 0x760   : > { %v2360_v3 = vcombine.low %v2332_v63, %v2339_v0  ;;  %v3661_v31 = vcombine.high %v2332_v63, %v2339_v0  ;;  %v2376_v4 = vcombine.low %v2348_v1, %v2355_v2  ;;  %v3662_v5 = vcombine.high %v2348_v1, %v2355_v2 }
 0x762   : > { %v2367_v6 = vrot.slane %v2360_v3, %v4309_v41  ;;  %v2375_v7 = vrot.slane %v3661_v31, %v4309_v41  ;;  %v2383_v8 = vrot.slane %v2376_v4, %v4309_v41  ;;  %v2391_v28 = vrot.slane %v3662_v5, %v4309_v41 }
 0x764   : > { %v2392_v9 = vcombine.low %v2367_v6, %v2375_v7  ;;  %v2393_v30 = vcombine.high %v2367_v6, %v2375_v7  ;;  %v2408_v10 = vcombine.low %v2383_v8, %v2391_v28  ;;  %v2409_v58 = vcombine.high %v2383_v8, %v2391_v28 }
 0x766   : > { %v2400_v11 = vrot.slane %v2392_v9, %v4319_v51  ;;  %v2407_v13 = vrot.slane %v2393_v30, %v4319_v51  ;;  %v2416_v15 = vrot.slane %v2408_v10, %v4319_v51  ;;  %v2423_v16 = vrot.slane %v2409_v58, %v4319_v51 }
 0x768   : > { %v2424_v20 = vcombine.low %v2400_v11, %v2416_v15  ;;  %v2425_v27 = vcombine.high %v2400_v11, %v2416_v15  ;;  %v2426_v21 = vcombine.low %v2407_v13, %v2423_v16  ;;  %v2427_v22 = vcombine.high %v2407_v13, %v2423_v16 }
 0x76a   : > { %v2676_v26 = vpack.c.bf16 %v2424_v20, %v2424_v20  ;;  %v2677_v57 = vpack.c.bf16 %v2425_v27, %v2425_v27  ;;  %v2678_v34 = vpack.c.bf16 %v2426_v21, %v2426_v21  ;;  %v2679_v35 = vpack.c.bf16 %v2427_v22, %v2427_v22 }
 0x76c   : > { %v2684_v59 = vsel %vm1651_vm7, %v2676_v26, 0  ;;  %v2730_v52 = vsel %vm1651_vm7, %v2677_v57, 0  ;;  %v2776_v18 = vsel %vm1651_vm7, %v2678_v34, 0  ;;  %v2822_v19 = vsel %vm1651_vm7, %v2679_v35, 0  ;;  %v3973_v57 = vld [vmem:[%s4803_s30] sm:$0xff]  }
 0x76d   : > { %3849 = vmatpush3.bf16.msra.mxu1 %v2684_v59  ;;  %3855 = vmatpush3.bf16.msra.mxu0 %v2730_v52 }
 0x76e   : > { %3860 = vmatprep.subr.bf16.mxu1 %v4055_v17  ;;  %3866 = vmatprep.subr.bf16.mxu0 %v4055_v17 }
 0x770   : > { %3851 = vmatmul.mubr.msk.bf16.vlgmr.msra.gmra.mrb[20].mxu1 %vm1403_vm6, %v2672_v36  ;;  %3857 = vmatmul.mubr.msk.bf16.vlgmr.msra.gmra.mrb[32].mxu0 %vm1403_vm6, %v2673_v37 }
 0x771   : > { %3861 = vmatpush3.bf16.msra.mxu1 %v2776_v18  ;;  %3867 = vmatpush3.bf16.msra.mxu0 %v2822_v19 }
 0x772   : > { %3862 = vmatprep.mubr.msk.bf16.mxu1 %vm4056_vm4, %v4055_v17  ;;  %3868 = vmatprep.mubr.msk.bf16.mxu0 %vm4056_vm4, %v4055_v17 }
 0x773   : > { %3872 = vmatprep.subr.bf16.mxu1 %v4055_v17  ;;  %3880 = vmatprep.subr.bf16.mxu0 %v4055_v17 }
 0x785   : > { %v2660_v43 = vpop.xlane.xlu0 %2659 }
 0x786   : > { %4013 = vrcp.f32 %v2660_v43  ;;  %v3974_v43 = vld [vmem:[%s4803_s30 + $0x8] sm:$0xff]   ;;  %s4806_s30 = scalar_lea.vmem %s4767_s10, %s4191_s1 }
 0x788   : > { %v2663_v44 = vpop.xlane.xlu1 %2662 }
 0x789   : > { %4015 = vrcp.f32 %v2663_v44 }
 0x790   : > { %v4014_v24 = vpop.eup %4013 }
 0x791   : > { %v2670_v48 = vmul.f32 %v4014_v24, %v4582_v32 }
 0x793   : > { %v4016_v49 = vpop.eup %4015  ;;  %v2674_v50 = vpack.c.bf16 %v2670_v48, %v2670_v48 }
 0x794   : > { %v2671_v53 = vmul.f32 %v4016_v49, %v4584_v33 }
 0x795   : > { %3863 = vmatmul.mubr.msk.bf16.vlgmr.msra.gmra.mrb[24].mxu1 %vm1403_vm6, %v2674_v50 }
 0x796   : > { %v2675_v54 = vpack.c.bf16 %v2671_v53, %v2671_v53  ;;  %3876 = vmatprep.mubr.msk.bf16.mxu1 %vm4056_vm4, %v4055_v17  ;;  %3873 = vmatpush3.bf16.msra.mxu1 %v3973_v57  ;;  %v3978_v57 = vld [vmem:[%s4233_s20 + $0x8] sm:$0xff]  }
 0x797   : > { %3874 = vmatprep.subr.bf16.mxu1 %v4055_v17 }
 0x798   : > { %3869 = vmatmul.mubr.msk.bf16.vlgmr.msra.gmra.mrb[36].mxu0 %vm1403_vm6, %v2675_v54 }
 0x799   : > { %3884 = vmatprep.mubr.msk.bf16.mxu0 %vm4056_vm4, %v4055_v17 }
 0x79a   : > { %3875 = vmatpush3.bf16.msra.mxu1 %v3974_v43 }
 0x79b   : > { %3888 = vmatprep.subr.bf16.mxu1 %v4055_v17 }
 0x843   : > { %v2720_v55 = vpop.f32.mrb[20].mxu1  ;;  %v2766_v56 = vpop.f32.mrb[32].mxu0 }
 0x844   : > { %v3852_v60 = vpop.f32.mrb[21].mxu1  ;;  %v3858_v61 = vpop.f32.mrb[33].mxu0 }
 0x845   : > { %v2723_v32 = vpop.f32.mrb[22].mxu1  ;;  %v2769_v62 = vpop.f32.mrb[34].mxu0 }
 0x846   : > { %v3853_v63 = vpop.f32.mrb[23].mxu1  ;;  %v3859_v0 = vpop.f32.mrb[35].mxu0 }
 0x868   : > { %v2812_v33 = vpop.f32.mrb[24].mxu1 }
 0x869   : > { %v2864_v1 = vcombine.low %v2720_v55, %v2812_v33  ;;  %v2865_v2 = vcombine.high %v2720_v55, %v2812_v33  ;;  %v3864_v3 = vpop.f32.mrb[25].mxu1 }
 0x86a   : > { %v2815_v31 = vpop.f32.mrb[26].mxu1 }
 0x86b   : > { %v3865_v4 = vpop.f32.mrb[27].mxu1  ;;  %v2858_v5 = vpop.f32.mrb[36].mxu0  ;;  %v2872_v9 = vrot.slane %v2864_v1, %v4309_v41  ;;  %v2879_v30 = vrot.slane %v2865_v2, %v4309_v41 }
 0x86c   : > { %v2880_v6 = vcombine.low %v2766_v56, %v2858_v5  ;;  %v2881_v7 = vcombine.high %v2766_v56, %v2858_v5  ;;  %v3870_v8 = vpop.f32.mrb[37].mxu0 }
 0x86d   : > { %v2861_v28 = vpop.f32.mrb[38].mxu0  ;;  %v4025_v8 = vld [vmem:[#allocation2] sm:$0xff] }
 0x86e   : > { %v2888_v10 = vrot.slane %v2880_v6, %v4309_v41  ;;  %v2895_v58 = vrot.slane %v2881_v7, %v4309_v41  ;;  %v3871_v11 = vpop.f32.mrb[39].mxu0 }
 0x870   : > { %v2896_v13 = vcombine.low %v2872_v9, %v2888_v10  ;;  %v2897_v14 = vcombine.high %v2872_v9, %v2888_v10  ;;  %v2912_v15 = vcombine.low %v2879_v30, %v2895_v58  ;;  %v2913_v16 = vcombine.high %v2879_v30, %v2895_v58  ;;  %v4026_v30 = vld [vmem:[#allocation2 + $0x8] sm:$0xff] }
 0x872   : > { %v2904_v12 = vrot.slane %v2896_v13, %v4319_v51  ;;  %v2911_v20 = vrot.slane %v2897_v14, %v4319_v51  ;;  %v2920_v27 = vrot.slane %v2912_v15, %v4319_v51  ;;  %v2927_v21 = vrot.slane %v2913_v16, %v4319_v51 }
 0x874   : > { %v2932_v22 = vcombine.low %v2904_v12, %v2911_v20  ;;  %v3671_v23 = vcombine.high %v2904_v12, %v2911_v20  ;;  %v2948_v25 = vcombine.low %v2920_v27, %v2927_v21  ;;  %v3672_v26 = vcombine.high %v2920_v27, %v2927_v21 }
 0x876   : > { %v2939_v59 = vrot.slane %v2932_v22, %v4309_v41  ;;  %v2947_v52 = vrot.slane %v3671_v23, %v4309_v41  ;;  %v2955_v34 = vrot.slane %v2948_v25, %v4309_v41  ;;  %v2963_v35 = vrot.slane %v3672_v26, %v4309_v41  ;;  %v3975_v23 = vld [vmem:[%s4223_s5] sm:$0xff]   ;;  %v3976_v25 = vld [vmem:[%s4223_s5 + $0x8] sm:$0xff]   ;;  %s4807_s5 = sld [smem:[#allocation13_spill]] (!%p3694_p6) }
 0x877   : > { %3881 = vmatpush3.bf16.msra.mxu0 %v3975_v23  ;;  %v3977_v26 = vld [vmem:[%s4233_s20] sm:$0xff]  }
 0x878   : > { %v2965_v36 = vcombine.high %v2939_v59, %v2947_v52  ;;  %v2981_v37 = vcombine.high %v2955_v34, %v2963_v35  ;;  %v2964_v18 = vcombine.low %v2939_v59, %v2947_v52  ;;  %v2980_v19 = vcombine.low %v2955_v34, %v2963_v35  ;;  %3882 = vmatprep.subr.bf16.mxu0 %v4055_v17  ;;  %v3979_v59 = vld [vmem:[%s4233_s20 + $0x10] sm:$0xff]   ;;  %v3980_v52 = vld [vmem:[%s4233_s20 + $0x18] sm:$0xff]   ;;  %v3981_v34 = vld [vmem:[%s4233_s20 + $0x20] sm:$0xff]  }
 0x879   : > { %v3982_v35 = vld [vmem:[%s4233_s20 + $0x28] sm:$0xff]  }
 0x87a   : > { %v2979_v44 = vrot.slane %v2965_v36, %v4319_v51  ;;  %v2995_v24 = vrot.slane %v2981_v37, %v4319_v51  ;;  %v2972_v48 = vrot.slane %v2964_v18, %v4319_v51  ;;  %v2988_v49 = vrot.slane %v2980_v19, %v4319_v51 }
 0x87b   : > { %3883 = vmatpush3.bf16.msra.mxu0 %v3976_v25  ;;  %v3692_v25 = vld [vmem:[%s800_s25] ss:$0 sm:$0xff] }
 0x87c   : > { %v2998_v41 = vcombine.low %v2979_v44, %v2995_v24  ;;  %v2997_v50 = vcombine.high %v2972_v48, %v2988_v49  ;;  %v2996_v53 = vcombine.low %v2972_v48, %v2988_v49  ;;  %v2999_v54 = vcombine.high %v2979_v44, %v2995_v24  ;;  %v3677_v48 = vld [vmem:[%s4805_s3] ss:$0 sm:$0xff]  ;;  %s4808_s3 = sld [smem:[#allocation14_spill]] (!%p3694_p6) }
 0x87e   : > { %v3961_v55 = vpack.i.bf16 %v2998_v41, %v1967_v45  ;;  %v3956_v56 = vpack.i.bf16 %v2997_v50, %v1966_v46  ;;  %v3966_v60 = vpack.i.bf16 %v2999_v54, %v1968_v47  ;;  %v3678_v54 = vld [vmem:[%s4806_s30] ss:$0 sm:$0xff]  ;;  %s4809_s30 = sld [smem:[#allocation15_spill]] (!%p3694_p6) }
 0x880   : > { %3962 = vrot.lane.b32.xlu1 %v3961_v55, %s4064_s26  ;;  %3957 = vrot.lane.b32.xlu0 %v3956_v56, %s4065_s29 }
 0x884   : > { %3967 = vrot.lane.b32.xlu0 %v3966_v60, %s4066_s21  ;;  %s4810_s26 = smov (!%p3694_p6), %s4809_s30 }
 0x8f2   : > { %v3963_v51 = vpop.permute.xlu1 %3962  ;;  %v3958_v61 = vpop.permute.xlu0 %3957 }
 0x8f3   : > { %v3960_v32 = vunpack.i.h.bf16 %v3958_v61  ;;  %v3959_v62 = vunpack.i.l.bf16 %v3958_v61  ;;  %v3965_v63 = vunpack.i.h.bf16 %v3963_v51  ;;  %v3964_v45 = vunpack.i.l.bf16 %v3963_v51  ;;  %v3983_v61 = vld [vmem:[%s4233_s20 + $0x30] sm:$0xff]  }
 0x8f5   : > { %v1981_v46 = vsel %vm1403_vm6, %v1965_v29, %v3959_v62  ;;  %v3012_v38 = vsel %vm1403_vm6, %v2996_v53, %v3960_v32  ;;  %v3984_v32 = vld [vmem:[%s4233_s20 + $0x38] sm:$0xff]   ;;  %v3679_v62 = vld [vmem:[%s789_s7] ss:$0 sm:$0xff] }
 0x8f6   : > { %v3968_v39 = vpop.permute.xlu0 %3967  ;;  %v1983_v33 = vsel %vm1982_vm8, %v1981_v46, %v3964_v45  ;;  %v3013_v1 = vsel %vm1982_vm8, %v3012_v38, %v3965_v63 }
 0x8f7   : > { %v3970_v47 = vunpack.i.h.bf16 %v3968_v39  ;;  %v3969_v0 = vunpack.i.l.bf16 %v3968_v39 }
 0x8f9   : > { %v1985_v2 = vsel %vm1984_vm9, %v1983_v33, %v3969_v0  ;;  %v3014_v3 = vsel %vm1984_vm9, %v3013_v1, %v3970_v47 }
 0x8fa   : > { %v3015_v31 = vpack.c.bf16 %v3014_v3, %v1985_v2 }
 0x8fc   : > { %3877 = vmatmul.mubr.msk.bf16.vlgmr.msra.gmra.mrb[28].mxu1 %vm907_vm5, %v3015_v31 }
 0x8fd   : > { %3904 = vmatprep.mubr.msk.bf16.mxu1 %vm4056_vm4, %v4055_v17  ;;  %3889 = vmatpush3.bf16.msra.mxu1 %v3977_v26 }
 0x8fe   : > { %3890 = vmatprep.subr.bf16.mxu1 %v4055_v17 }
 0x901   : > { %3891 = vmatpush3.bf16.msra.mxu1 %v3978_v57 }
 0x902   : > { %3892 = vmatprep.subr.bf16.mxu1 %v4055_v17 }
 0x905   : > { %3893 = vmatpush3.bf16.msra.mxu1 %v3979_v59  ;;  %v3693_v59 = vld [vmem:[%s803_s17] ss:$0 sm:$0xff] }
 0x906   : > { %3894 = vmatprep.subr.bf16.mxu1 %v4055_v17 }
 0x909   : > { %3895 = vmatpush3.bf16.msra.mxu1 %v3980_v52 }
 0x90a   : > { %3896 = vmatprep.subr.bf16.mxu1 %v4055_v17 }
 0x90d   : > { %3897 = vmatpush3.bf16.msra.mxu1 %v3981_v34 }
 0x90e   : > { %3898 = vmatprep.subr.bf16.mxu1 %v4055_v17 }
 0x911   : > { %3899 = vmatpush3.bf16.msra.mxu1 %v3982_v35 }
 0x912   : > { %3900 = vmatprep.subr.bf16.mxu1 %v4055_v17 }
 0x915   : > { %3901 = vmatpush3.bf16.msra.mxu1 %v3983_v61 }
 0x916   : > { %3902 = vmatprep.subr.bf16.mxu1 %v4055_v17  ;;  %v3683_v17 = vld [vmem:[%s797_s2] ss:$0 sm:$0xff] }
 0x919   : > { %3903 = vmatpush3.bf16.msra.mxu1 %v3984_v32 }
 0x9cf   : > { %v3076_v42 = vpop.f32.mrb[28].mxu1 }
 0x9d0   : > { %v3077_v29 = vadd.f32 %v3673_v40, %v3076_v42  ;;  %v3878_v4 = vpop.f32.mrb[29].mxu1 }
 0x9d1   : > { %v3079_v5 = vpop.f32.mrb[30].mxu1 }
 0x9d2   : > { %v3080_v6 = vadd.f32 %v3673_v40, %v3079_v5  ;;  %v3879_v7 = vpop.f32.mrb[31].mxu1  ;;  %v3083_v28 = vadd.f32 %v4025_v8, %v3077_v29 }
 0x9d4   : > { %v3087_v9 = vsel %vm907_vm5, %v3083_v28, 0.0  ;;  %v3084_v10 = vadd.f32 %v4026_v30, %v3080_v6 }
 0x9d5   : > { %3088 = vadd.xlane.f32.xlu1 %v3087_v9 }
 0x9d6   : > { %v3090_v58 = vsel %vm907_vm5, %v3084_v10, 0.0 }
 0x9d7   : > { %3091 = vadd.xlane.f32.xlu0 %v3090_v58 }
 0xa62   : > { %v3089_v11 = vpop.xlane.xlu1 %3088 }
 0xa63   : > { %v3094_v13 = vmul.f32 0.03125, %v3089_v11 }
 0xa64   : > { %v3092_v14 = vpop.xlane.xlu0 %3091 }
 0xa65   : > { %v3096_v15 = vsub.f32 %v3083_v28, %v3094_v13  ;;  %v3095_v16 = vmul.f32 0.03125, %v3092_v14 }
 0xa67   : > { %v3097_v12 = vsub.f32 %v3084_v10, %v3095_v16  ;;  %v3098_v20 = vmul.f32 %v3096_v15, %v3096_v15 }
 0xa69   : > { %v3100_v27 = vsel %vm907_vm5, %v3098_v20, 0.0  ;;  %v3099_v21 = vmul.f32 %v3097_v12, %v3097_v12 }
 0xa6a   : > { %3101 = vadd.xlane.f32.xlu0 %v3100_v27 }
 0xa6b   : > { %v3103_v22 = vsel %vm907_vm5, %v3099_v21, 0.0 }
 0xa6c   : > { %3104 = vadd.xlane.f32.xlu1 %v3103_v22 }
 0xaf7   : > { %v3102_v36 = vpop.xlane.xlu0 %3101 }
 0xaf8   : > { %v3106_v37 = vmul.f32 0.03125, %v3102_v36 }
 0xaf9   : > { %v3105_v18 = vpop.xlane.xlu1 %3104 }
 0xafa   : > { %v3108_v19 = vadd.f32 1e-05, %v3106_v37  ;;  %v3107_v43 = vmul.f32 0.03125, %v3105_v18  ;;  %v4027_v18 = vld [vmem:[%s4807_s5] sm:$0xff] (!%p3694_p6)  }
 0xafc   : > { %4017 = vrsqrt.f32 %v3108_v19  ;;  %v3109_v44 = vadd.f32 1e-05, %v3107_v43  ;;  %v4067_v19 = vmov (!%p3694_p6), 0.0   ;;  %v4028_v43 = vld [vmem:[%s4807_s5 + $0x8] sm:$0xff] (!%p3694_p6)  }
 0xafd   : > { %3908 = vmatprep.subr.bf16.mxu0 (!%p3694_p6), %v4067_v19 }
 0xafe   : > { %4019 = vrsqrt.f32 %v3109_v44 }
 0xb06   : > { %v4018_v24 = vpop.eup %4017 }
 0xb07   : > { %v3112_v49 = vmul.f32 %v4018_v24, %v3096_v15  ;;  %v3695_v24 = vld [vmem:[%s4808_s3] ss:$0 sm:$0xff] (!%p3694_p6) }
 0xb08   : > { %v4020_v41 = vpop.eup %4019 }
 0xb09   : > { %v3120_v50 = vmul.f32 %v3677_v48, %v3112_v49  ;;  %v3113_v53 = vmul.f32 %v4020_v41, %v3097_v12 }
 0xb0b   : > { %v3121_v55 = vmul.f32 %v3677_v48, %v3113_v53  ;;  %v3128_v56 = vadd.f32 %v3678_v54, %v3120_v50 }
 0xb0d   : > { %v3129_v60 = vadd.f32 %v3678_v54, %v3121_v55 }
 0xb0f   : > { %v3130_v51 = vpack.c.bf16 %v3129_v60, %v3128_v56 }
 0xb11   : > { %3885 = vmatmul.mubr.msk.bf16.vlgmr.msra.gmra.mrb[40].mxu0 %vm907_vm5, %v3130_v51 }
 0xb12   : > { %3909 = vmatpush3.bf16.msra.mxu0 (!%p3694_p6), %v4027_v18  ;;  %3912 = vmatprep.mubr.msk.bf16.mxu0 (!%p3694_p6), %vm4068_vm10, %v4067_v19 }
 0xb13   : > { %3910 = vmatprep.subr.bf16.mxu0 (!%p3694_p6), %v4067_v19 }
 0xb16   : > { %3911 = vmatpush3.bf16.msra.mxu0 (!%p3694_p6), %v4028_v43 }
 0xbe4   : > { %v3191_v63 = vpop.f32.mrb[40].mxu0 }
 0xbe5   : > { %v3192_v45 = vadd.f32 %v3679_v62, %v3191_v63  ;;  %v3886_v46 = vpop.f32.mrb[41].mxu0 }
 0xbe6   : > { %v3194_v38 = vpop.f32.mrb[42].mxu0 }
 0xbe7   : > { %v3195_v39 = vadd.f32 %v3679_v62, %v3194_v38  ;;  %v3887_v47 = vpop.f32.mrb[43].mxu0  ;;  %v3198_v0 = vmax.f32 %v3192_v45, 0.0 }
 0xbe9   : > { %v3199_v33 = vmax.f32 %v3195_v39, 0.0 }
 0xbeb   : > { %v3200_v1 = vpack.c.bf16 %v3199_v33, %v3198_v0 }
 0xbed   : > { %3905 = vmatmul.mubr.bf16.vlgmr.msra.gmra.mrb[32].mxu1 %v3200_v1 }
 0xcc0   : > { %v3306_v2 = vpop.f32.mrb[32].mxu1 }
 0xcc1   : > { %v3307_v3 = vadd.f32 %v3683_v17, %v3306_v2  ;;  %v3906_v31 = vpop.f32.mrb[33].mxu1 }
 0xcc2   : > { %v3309_v40 = vpop.f32.mrb[34].mxu1 }
 0xcc3   : > { %v3310_v42 = vadd.f32 %v3683_v17, %v3309_v40  ;;  %v3907_v29 = vpop.f32.mrb[35].mxu1  ;;  %v3313_v4 = vadd.f32 %v3307_v3, %v3128_v56 }
 0xcc5   : > { %v3317_v5 = vsel %vm907_vm5, %v3313_v4, 0.0  ;;  %v3314_v6 = vadd.f32 %v3310_v42, %v3129_v60 }
 0xcc6   : > { %3318 = vadd.xlane.f32.xlu0 %v3317_v5 }
 0xcc7   : > { %v3320_v7 = vsel %vm907_vm5, %v3314_v6, 0.0 }
 0xcc8   : > { %3321 = vadd.xlane.f32.xlu1 %v3320_v7 }
 0xd53   : > { %v3319_v8 = vpop.xlane.xlu0 %3318 }
 0xd54   : > { %v3323_v28 = vmul.f32 0.03125, %v3319_v8 }
 0xd55   : > { %v3322_v9 = vpop.xlane.xlu1 %3321 }
 0xd56   : > { %v3325_v30 = vsub.f32 %v3313_v4, %v3323_v28  ;;  %v3324_v10 = vmul.f32 0.03125, %v3322_v9 }
 0xd58   : > { %v3326_v58 = vsub.f32 %v3314_v6, %v3324_v10  ;;  %v3327_v11 = vmul.f32 %v3325_v30, %v3325_v30 }
 0xd5a   : > { %v3329_v13 = vsel %vm907_vm5, %v3327_v11, 0.0  ;;  %v3328_v14 = vmul.f32 %v3326_v58, %v3326_v58 }
 0xd5b   : > { %3330 = vadd.xlane.f32.xlu0 %v3329_v13 }
 0xd5c   : > { %v3332_v15 = vsel %vm907_vm5, %v3328_v14, 0.0 }
 0xd5d   : > { %3333 = vadd.xlane.f32.xlu1 %v3332_v15 }
 0xde8   : > { %v3331_v16 = vpop.xlane.xlu0 %3330 }
 0xde9   : > { %v3335_v12 = vmul.f32 0.03125, %v3331_v16 }
 0xdea   : > { %v3334_v20 = vpop.xlane.xlu1 %3333 }
 0xdeb   : > { %v3337_v27 = vadd.f32 1e-05, %v3335_v12  ;;  %v3336_v21 = vmul.f32 0.03125, %v3334_v20 }
 0xded   : > { %4021 = vrsqrt.f32 %v3337_v27  ;;  %v3338_v22 = vadd.f32 1e-05, %v3336_v21 }
 0xdef   : > { %4023 = vrsqrt.f32 %v3338_v22 }
 0xdf7   : > { %v4022_v23 = vpop.eup %4021 }
 0xdf8   : > { %v3341_v26 = vmul.f32 %v4022_v23, %v3325_v30 }
 0xdf9   : > { %v4024_v57 = vpop.eup %4023 }
 0xdfa   : > { %v3349_v52 = vmul.f32 %v3692_v25, %v3341_v26  ;;  %v3342_v34 = vmul.f32 %v4024_v57, %v3326_v58  ;;  %3364 = sbr.rel (%p3694_p6) target bundleno = 3803 (0xedb), region = 104 }
 0xdfc   : > { %v3357_v35 = vadd.f32 %v3693_v59, %v3349_v52  ;;  %v3350_v36 = vmul.f32 %v3692_v25, %v3342_v34 }
 0xdfe   : > { %3359 = vst.msk [vmem:[#allocation2] sm:$0xff] %vm907_vm5, %v3357_v35  ;;  %v3358_v37 = vadd.f32 %v3693_v59, %v3350_v36 }
 0xe00   : > { %3360 = vst.msk [vmem:[#allocation2 + $0x8] sm:$0xff] %vm907_vm5, %v3358_v37  ;;  %v3365_v44 = vpack.c.bf16 (!%p3694_p6), %v3358_v37, %v3357_v35 }
 0xe02   : > { %3913 = vmatmul.mubr.msk.bf16.vlgmr.msra.gmra.mrb[0].mxu0 %vm907_vm5, %v3365_v44 }
 0xed5   : > { %v3426_v48 = vpop.f32.mrb[0].mxu0 }
 0xed6   : > { %v3427_v49 = vadd.f32 %v3695_v24, %v3426_v48  ;;  %v3914_v41 = vpop.f32.mrb[1].mxu0 }
 0xed7   : > { %v3429_v50 = vpop.f32.mrb[2].mxu0 }
 0xed8   : > { %3434 = vst.msk [vmem:[%s4809_s30] sm:$0xff] %vm3433_vm11, %v3427_v49  ;;  %v3430_v53 = vadd.f32 %v3695_v24, %v3429_v50  ;;  %v3915_v54 = vpop.f32.mrb[3].mxu0 }
 0xeda   : > { %3435 = vst.msk [vmem:[%s4810_s26 + $0x8] sm:$0xff] %vm3433_vm11, %v3430_v53 }
 0xedb PF: > { %s4811_s24 = sld [smem:[#allocation4_spill]]  ;;  %s4812_s0 = sld [smem:[#allocation3_spill]] }
 0xedc   : > { %s4813_s30 = sld [smem:[#allocation5_spill]] }
 0xee1   : > { %s29_s20 = sadd.s32 1, %s4811_s24  }
 0xee2   : > { %p26_p7 = scmp.ge.s32.totalorder %s29_s20, 4  }
 0xee4   :  { %28 = sbr.rel (!%p26_p7) target bundleno = 10 (0xa), region = 170 }

</bundles_post_ra>
